<compile_context>
chip_gen: v7x
topology: tpu7x:2x2x1
jax: 0.10.0
libtpu: 0.0.40
codegen_flags: <defaults>
</compile_context>

<pallas_src>
import functools

import jax
import jax.numpy as jnp
import numpy as np
from jax.experimental import pallas as pl
from jax.experimental.pallas import tpu as pltpu

NEG_SLOPE = 0.2
EPS = 1e-5

_VMEM = pl.BlockSpec(memory_space=pltpu.MemorySpace.VMEM)


# ---------------------------------------------------------------------------
# Fused kernel (everything in VMEM, lane-dense (B*H, W*C) layout)
# ---------------------------------------------------------------------------
def fused_residual_block_kernel(x_ref, wb1_ref, wb2_ref, wbs_ref,
                                g1_ref, be1_ref, g2_ref, be2_ref, gs_ref, bes_ref,
                                o_ref, *, B, H, W, Cout):
    f32 = jnp.float32
    BH = B * H
    WC = W * Cout
    inv_n = 1.0 / float(B * H * W)

    # Same-channel indicator P[l, l'] = 1 iff lanes l and l' hold the same channel
    # (lane index = w*Cout + c).  Turns per-lane column sums into per-channel sums
    # broadcast back over the lane pattern with one small f32 matmul.
    li = jax.lax.broadcasted_iota(jnp.int32, (WC, WC), 0) % Cout
    lj = jax.lax.broadcasted_iota(jnp.int32, (WC, WC), 1) % Cout
    chan = jnp.where(li == lj, jnp.float32(1.0), jnp.float32(0.0))

    def batch_norm(y, gamma_t, beta_t):
        # y: (BH, WC) f32.  Training-mode BN with biased batch statistics, kept in f32.
        mean = jnp.dot(jnp.sum(y, axis=0, keepdims=True), chan,
                       preferred_element_type=f32) * inv_n
        d = y - mean
        var = jnp.dot(jnp.sum(d * d, axis=0, keepdims=True), chan,
                      preferred_element_type=f32) * inv_n
        return d * jax.lax.rsqrt(var + EPS) * gamma_t + beta_t

    def leaky(v):
        return jnp.where(v >= 0, v, NEG_SLOPE * v)

    def shifted_rows(y, kh):
        # Rows are ordered (b, h).  Shift by (kh - 1) rows within each image, zero-filled
        # at the image boundary (the conv's H-direction halo), via XLU roll + row mask.
        if kh == 1:
            return y
        shift = 1 if kh == 0 else BH - 1           # +1 / -1 (mod BH) row rotation
        rolled = pltpu.roll(y, shift=shift, axis=0)
        row = jax.lax.broadcasted_iota(jnp.int32, y.shape, 0) % H
        edge = 0 if kh == 0 else H - 1
        return jnp.where(row != edge, rolled, jnp.zeros_like(rolled))

    def conv3x3(y_f32, wb_ref):
        # y_f32: (BH, W*Ci) f32; wb_ref: (3, W*Ci, W*Cout) banded bf16 weight.
        # kw taps + channel contraction folded into the weight; kh taps via row shifts.
        acc = jnp.zeros((BH, WC), f32)
        for kh in range(3):
            lhs = shifted_rows(y_f32, kh).astype(jnp.bfloat16)
            acc = acc + jnp.dot(lhs, wb_ref[kh], preferred_element_type=f32)
        return acc

    x_bf16 = x_ref[...]                            # (BH, W*Cin) bf16
    x_f32 = x_bf16.astype(f32)

    # main branch: conv3x3 -> BN -> LeakyReLU -> conv3x3 -> BN
    # (conv biases omitted: a per-channel constant before training BN cancels exactly)
    y1 = leaky(batch_norm(conv3x3(x_f32, wb1_ref), g1_ref[...], be1_ref[...]))
    y2 = batch_norm(conv3x3(y1, wb2_ref), g2_ref[...], be2_ref[...])

    # shortcut branch: conv1x1 -> BN  (block-diagonal banded weight, one matmul)
    sc = batch_norm(jnp.dot(x_bf16, wbs_ref[...], preferred_element_type=f32),
                    gs_ref[...], bes_ref[...])

    # residual add + LeakyReLU; (BH, W*Cout) lane-dense full store
    o_ref[...] = leaky(y2 + sc)


# ---------------------------------------------------------------------------
# Wrapper-side weight / parameter packing (runs once under jit, tiny)
# ---------------------------------------------------------------------------
def _band_weights_3x3(w, W):
    """w: (3, 3, Ci, Co) HWIO -> (3, W*Ci, W*Co) banded per-kh weight.

    Row = w_in*Ci + ci, column = w_out*Co + co; entry = w[kh, kw, ci, co] with
    kw = w_in - w_out + 1 if 0 <= kw <= 2 else 0 (this realizes SAME padding along W).
    """
    _, _, Ci, Co = w.shape
    w_in = jnp.arange(W)
    w_out = jnp.arange(W)
    kw = w_in[:, None] - w_out[None, :] + 1                       # (W, W)
    valid = ((kw >= 0) & (kw <= 2)).astype(w.dtype)
    blocks = w[:, jnp.clip(kw, 0, 2)]                             # (3, W, W, Ci, Co)
    blocks = blocks * valid[None, :, :, None, None]
    return blocks.transpose(0, 1, 3, 2, 4).reshape(3, W * Ci, W * Co)


def _band_weights_1x1(ws, W):
    """ws: (Ci, Co) -> (W*Ci, W*Co) block-diagonal weight for the 1x1 shortcut conv."""
    Ci, Co = ws.shape
    eye = jnp.eye(W, dtype=ws.dtype)
    return (eye[:, None, :, None] * ws[None, :, None, :]).reshape(W * Ci, W * Co)


def _tile_per_channel(v, W):
    """(1, C) per-channel BN parameter -> (1, W*C) matching the lane-dense layout."""
    return jnp.tile(v.reshape(1, -1), (1, W))


def residual_block_nhwc(x_nhwc, p):
    B, H, W, Cin = x_nhwc.shape
    Cout = p["w1"].shape[-1]
    bf16, f32 = jnp.bfloat16, jnp.float32

    x_mat = x_nhwc.reshape(B * H, W * Cin).astype(bf16)           # (B*H, W*Cin)
    wb1 = _band_weights_3x3(p["w1"], W).astype(bf16)              # (3, W*Cin, W*Cout)
    wb2 = _band_weights_3x3(p["w2"], W).astype(bf16)              # (3, W*Cout, W*Cout)
    wbs = _band_weights_1x1(p["ws"], W).astype(bf16)              # (W*Cin, W*Cout)
    bn_params = [_tile_per_channel(p[k], W).astype(f32)
                 for k in ("g1", "be1", "g2", "be2", "gs", "bes")]

    kernel = functools.partial(fused_residual_block_kernel, B=B, H=H, W=W, Cout=Cout)
    out_mat = pl.pallas_call(
        kernel,
        out_shape=jax.ShapeDtypeStruct((B * H, W * Cout), f32),
        in_specs=[_VMEM] * 10,
        out_specs=_VMEM,
        compiler_params=pltpu.CompilerParams(vmem_limit_bytes=32 * 1024 * 1024),
    )(x_mat, wb1, wb2, wbs, *bn_params)
    return out_mat.reshape(B, H, W, Cout)


def residual_block_nchw(x_nchw, p):
    # NCHW <-> NHWC transposes done exactly once each; keep NHWC if blocks are stacked.
    x_nhwc = jnp.transpose(x_nchw, (0, 2, 3, 1))
    return jnp.transpose(residual_block_nhwc(x_nhwc, p), (0, 3, 1, 2))


# ---------------------------------------------------------------------------
# Pure-JAX reference (module semantics; includes the conv biases the kernel drops)
# ---------------------------------------------------------------------------
def ref_forward_nhwc(x, p, conv_dtype=jnp.float32):
    """conv_dtype=bfloat16 mirrors the kernel's matmul-operand precision (f32 accumulation)."""
    def conv(x, w, b):
        y = jax.lax.conv_general_dilated(
            x.astype(conv_dtype), w.astype(conv_dtype), (1, 1), "SAME",
            dimension_numbers=("NHWC", "HWIO", "NHWC"),
            preferred_element_type=jnp.float32)
        return y + b.reshape(1, 1, 1, -1)

    def bn(y, g, be):
        m = jnp.mean(y, axis=(0, 1, 2), keepdims=True)
        v = jnp.mean((y - m) ** 2, axis=(0, 1, 2), keepdims=True)
        return (y - m) * jax.lax.rsqrt(v + EPS) * g.reshape(1, 1, 1, -1) + be.reshape(1, 1, 1, -1)

    def lrelu(v):
        return jnp.where(v >= 0, v, NEG_SLOPE * v)

    ws_4d = p["ws"].reshape(1, 1, *p["ws"].shape)
    y = lrelu(bn(conv(x, p["w1"], p["b1"][0]), p["g1"][0], p["be1"][0]))
    y = bn(conv(y, p["w2"], p["b2"][0]), p["g2"][0], p["be2"][0])
    sc = bn(conv(x, ws_4d, p["bs"][0]), p["gs"][0], p["bes"][0])
    return lrelu(y + sc)


# ---------------------------------------------------------------------------
# Deterministic parameter construction (synthetic; shapes follow the nn.Module)
# ---------------------------------------------------------------------------
def make_params(key, cin, cout):
    ks = jax.random.split(key, 12)
    f32 = jnp.float32
    return {
        "w1": 0.1 * jax.random.normal(ks[0], (3, 3, cin, cout), f32),   # Conv2d(cin,cout,3)
        "b1": 0.1 * jax.random.normal(ks[1], (1, cout), f32),
        "g1": 1.0 + 0.1 * jax.random.normal(ks[2], (1, cout), f32),     # BatchNorm2d
        "be1": 0.1 * jax.random.normal(ks[3], (1, cout), f32),
        "w2": 0.1 * jax.random.normal(ks[4], (3, 3, cout, cout), f32),  # Conv2d(cout,cout,3)
        "b2": 0.1 * jax.random.normal(ks[5], (1, cout), f32),
        "g2": 1.0 + 0.1 * jax.random.normal(ks[6], (1, cout), f32),     # BatchNorm2d
        "be2": 0.1 * jax.random.normal(ks[7], (1, cout), f32),
        "ws": 0.1 * jax.random.normal(ks[8], (cin, cout), f32),         # Conv2d(cin,cout,1)
        "bs": 0.1 * jax.random.normal(ks[9], (1, cout), f32),
        "gs": 1.0 + 0.1 * jax.random.normal(ks[10], (1, cout), f32),    # BatchNorm2d
        "bes": 0.1 * jax.random.normal(ks[11], (1, cout), f32),
    }


if __name__ == "__main__":
    B, CIN, COUT, H, W = 2, 4, 8, 16, 16

    key = jax.random.PRNGKey(0)
    k_x, k_p = jax.random.split(key)
    params = make_params(k_p, CIN, COUT)
    x_nchw = jax.random.normal(k_x, (B, CIN, H, W), jnp.float32)   # PyTorch-convention NCHW

    out_nchw = jax.jit(residual_block_nchw)(x_nchw, params)
    out_nchw = jax.block_until_ready(out_nchw)

    x_nhwc = jnp.transpose(x_nchw, (0, 2, 3, 1))
    # Tight check vs. a reference using the same bf16 matmul-operand precision (the reference
    # keeps the conv biases the kernel drops -- training-mode BN cancels them exactly).
    ref_bf16 = jnp.transpose(ref_forward_nhwc(x_nhwc, params, jnp.bfloat16), (0, 3, 1, 2))
    np.testing.assert_allclose(np.asarray(out_nchw), np.asarray(ref_bf16),
                               rtol=5e-3, atol=5e-3)
    # Coarse sanity check vs. full-f32 module semantics (bf16 operand rounding is the only diff).
    ref_f32 = jnp.transpose(ref_forward_nhwc(x_nhwc, params, jnp.float32), (0, 3, 1, 2))
    np.testing.assert_allclose(np.asarray(out_nchw), np.asarray(ref_f32),
                               rtol=1e-1, atol=1e-1)

    print("KERNEL_OK")
</pallas_src>

<mosaic_0001>
module attributes {stable_mosaic.version = 11 : i64} {
  func.func @fused_residual_block_kernel(%arg0: memref<32x64xbf16, #tpu.memory_space<vmem>>, %arg1: memref<3x64x128xbf16, #tpu.memory_space<vmem>>, %arg2: memref<3x128x128xbf16, #tpu.memory_space<vmem>>, %arg3: memref<64x128xbf16, #tpu.memory_space<vmem>>, %arg4: memref<1x128xf32, #tpu.memory_space<vmem>>, %arg5: memref<1x128xf32, #tpu.memory_space<vmem>>, %arg6: memref<1x128xf32, #tpu.memory_space<vmem>>, %arg7: memref<1x128xf32, #tpu.memory_space<vmem>>, %arg8: memref<1x128xf32, #tpu.memory_space<vmem>>, %arg9: memref<1x128xf32, #tpu.memory_space<vmem>>, %arg10: memref<32x128xf32, #tpu.memory_space<vmem>>) attributes {dimension_semantics = [], scalar_prefetch = 0 : i64, scratch_operands = 0 : i64, tpu.core_type = #tpu.core_type<tc>} {
    %0 = tpu.iota {dimensions = array<i32: 0>} : vector<128x128xi32>
    %c8_i32 = arith.constant 8 : i32
    %c0_i32 = arith.constant 0 : i32
    %1 = arith.cmpi eq, %c8_i32, %c0_i32 : i32
    %c1_i32 = arith.constant 1 : i32
    %2 = arith.select %1, %c1_i32, %c8_i32 : i32
    %3 = vector.broadcast %2 : i32 to vector<128x128xi32>
    %4 = arith.remsi %0, %3 : vector<128x128xi32>
    %c0_i32_0 = arith.constant 0 : i32
    %5 = vector.broadcast %c0_i32_0 : i32 to vector<128x128xi32>
    %6 = arith.cmpi ne, %4, %5 : vector<128x128xi32>
    %c0_i32_1 = arith.constant 0 : i32
    %7 = vector.broadcast %c0_i32_1 : i32 to vector<128x128xi32>
    %8 = arith.cmpi slt, %4, %7 : vector<128x128xi32>
    %c0_i32_2 = arith.constant 0 : i32
    %9 = arith.cmpi slt, %2, %c0_i32_2 : i32
    %10 = vector.broadcast %9 : i1 to vector<128x128xi1>
    %11 = vector.broadcast %10 : vector<128x128xi1> to vector<128x128xi1>
    %12 = arith.xori %8, %11 : vector<128x128xi1>
    %13 = arith.andi %12, %6 : vector<128x128xi1>
    %14 = vector.broadcast %2 : i32 to vector<128x128xi32>
    %15 = arith.addi %4, %14 : vector<128x128xi32>
    %16 = arith.select %13, %15, %4 : vector<128x128xi1>, vector<128x128xi32>
    %17 = tpu.iota {dimensions = array<i32: 1>} : vector<128x128xi32>
    %c8_i32_3 = arith.constant 8 : i32
    %c0_i32_4 = arith.constant 0 : i32
    %18 = arith.cmpi eq, %c8_i32_3, %c0_i32_4 : i32
    %c1_i32_5 = arith.constant 1 : i32
    %19 = arith.select %18, %c1_i32_5, %c8_i32_3 : i32
    %20 = vector.broadcast %19 : i32 to vector<128x128xi32>
    %21 = arith.remsi %17, %20 : vector<128x128xi32>
    %c0_i32_6 = arith.constant 0 : i32
    %22 = vector.broadcast %c0_i32_6 : i32 to vector<128x128xi32>
    %23 = arith.cmpi ne, %21, %22 : vector<128x128xi32>
    %c0_i32_7 = arith.constant 0 : i32
    %24 = vector.broadcast %c0_i32_7 : i32 to vector<128x128xi32>
    %25 = arith.cmpi slt, %21, %24 : vector<128x128xi32>
    %c0_i32_8 = arith.constant 0 : i32
    %26 = arith.cmpi slt, %19, %c0_i32_8 : i32
    %27 = vector.broadcast %26 : i1 to vector<128x128xi1>
    %28 = vector.broadcast %27 : vector<128x128xi1> to vector<128x128xi1>
    %29 = arith.xori %25, %28 : vector<128x128xi1>
    %30 = arith.andi %29, %23 : vector<128x128xi1>
    %31 = vector.broadcast %19 : i32 to vector<128x128xi32>
    %32 = arith.addi %21, %31 : vector<128x128xi32>
    %33 = arith.select %30, %32, %21 : vector<128x128xi1>, vector<128x128xi32>
    %34 = arith.cmpi eq, %16, %33 : vector<128x128xi32>
    %cst = arith.constant 1.000000e+00 : f32
    %cst_9 = arith.constant 0.000000e+00 : f32
    %35 = vector.broadcast %cst : f32 to vector<128x128xf32>
    %36 = vector.broadcast %cst_9 : f32 to vector<128x128xf32>
    %37 = arith.select %34, %35, %36 : vector<128x128xi1>, vector<128x128xf32>
    %c0 = arith.constant 0 : index
    %c0_10 = arith.constant 0 : index
    %38 = vector.load %arg0[%c0, %c0_10] : memref<32x64xbf16, #tpu.memory_space<vmem>>, vector<32x64xbf16>
    %39 = arith.extf %38 : vector<32x64xbf16> to vector<32x64xf32>
    %cst_11 = arith.constant 0.000000e+00 : f32
    %40 = vector.broadcast %cst_11 : f32 to vector<32x128xf32>
    %c1_i32_12 = arith.constant 1 : i32
    %41 = tpu.dynamic_rotate %39 by %c1_i32_12 dim 0 : vector<32x64xf32>, i32 -> vector<32x64xf32>
    %42 = tpu.iota {dimensions = array<i32: 0>} : vector<32x64xi32>
    %c16_i32 = arith.constant 16 : i32
    %c0_i32_13 = arith.constant 0 : i32
    %43 = arith.cmpi eq, %c16_i32, %c0_i32_13 : i32
    %c1_i32_14 = arith.constant 1 : i32
    %44 = arith.select %43, %c1_i32_14, %c16_i32 : i32
    %45 = vector.broadcast %44 : i32 to vector<32x64xi32>
    %46 = arith.remsi %42, %45 : vector<32x64xi32>
    %c0_i32_15 = arith.constant 0 : i32
    %47 = vector.broadcast %c0_i32_15 : i32 to vector<32x64xi32>
    %48 = arith.cmpi ne, %46, %47 : vector<32x64xi32>
    %c0_i32_16 = arith.constant 0 : i32
    %49 = vector.broadcast %c0_i32_16 : i32 to vector<32x64xi32>
    %50 = arith.cmpi slt, %46, %49 : vector<32x64xi32>
    %c0_i32_17 = arith.constant 0 : i32
    %51 = arith.cmpi slt, %44, %c0_i32_17 : i32
    %52 = vector.broadcast %51 : i1 to vector<32x64xi1>
    %53 = vector.broadcast %52 : vector<32x64xi1> to vector<32x64xi1>
    %54 = arith.xori %50, %53 : vector<32x64xi1>
    %55 = arith.andi %54, %48 : vector<32x64xi1>
    %56 = vector.broadcast %44 : i32 to vector<32x64xi32>
    %57 = arith.addi %46, %56 : vector<32x64xi32>
    %58 = arith.select %55, %57, %46 : vector<32x64xi1>, vector<32x64xi32>
    %c0_i32_18 = arith.constant 0 : i32
    %59 = vector.broadcast %c0_i32_18 : i32 to vector<32x64xi32>
    %60 = arith.cmpi ne, %58, %59 : vector<32x64xi32>
    %cst_19 = arith.constant 0.000000e+00 : f32
    %61 = vector.broadcast %cst_19 : f32 to vector<32x64xf32>
    %62 = arith.select %60, %41, %61 : vector<32x64xi1>, vector<32x64xf32>
    %63 = arith.truncf %62 : vector<32x64xf32> to vector<32x64xbf16>
    %c0_20 = arith.constant 0 : index
    %c0_21 = arith.constant 0 : index
    %c0_22 = arith.constant 0 : index
    %64 = vector.load %arg1[%c0_20, %c0_21, %c0_22] : memref<3x64x128xbf16, #tpu.memory_space<vmem>>, vector<1x64x128xbf16>
    %65 = vector.shape_cast %64 : vector<1x64x128xbf16> to vector<64x128xbf16>
    %cst_23 = arith.constant dense<0.000000e+00> : vector<32x128xf32>
    %66 = tpu.matmul %63, %65, %cst_23 {dimension_numbers = #tpu.dot_dimension_numbers<[1], [0], [0], [1], [0, 0, 1, 1], [], []>} : vector<32x64xbf16>, vector<64x128xbf16>, vector<32x128xf32> -> vector<32x128xf32>
    %67 = arith.addf %40, %66 : vector<32x128xf32>
    %68 = arith.truncf %39 : vector<32x64xf32> to vector<32x64xbf16>
    %c1 = arith.constant 1 : index
    %c0_24 = arith.constant 0 : index
    %c0_25 = arith.constant 0 : index
    %69 = vector.load %arg1[%c1, %c0_24, %c0_25] : memref<3x64x128xbf16, #tpu.memory_space<vmem>>, vector<1x64x128xbf16>
    %70 = vector.shape_cast %69 : vector<1x64x128xbf16> to vector<64x128xbf16>
    %cst_26 = arith.constant dense<0.000000e+00> : vector<32x128xf32>
    %71 = tpu.matmul %68, %70, %cst_26 {dimension_numbers = #tpu.dot_dimension_numbers<[1], [0], [0], [1], [0, 0, 1, 1], [], []>} : vector<32x64xbf16>, vector<64x128xbf16>, vector<32x128xf32> -> vector<32x128xf32>
    %72 = arith.addf %67, %71 : vector<32x128xf32>
    %c31_i32 = arith.constant 31 : i32
    %73 = tpu.dynamic_rotate %39 by %c31_i32 dim 0 : vector<32x64xf32>, i32 -> vector<32x64xf32>
    %74 = tpu.iota {dimensions = array<i32: 0>} : vector<32x64xi32>
    %c16_i32_27 = arith.constant 16 : i32
    %c0_i32_28 = arith.constant 0 : i32
    %75 = arith.cmpi eq, %c16_i32_27, %c0_i32_28 : i32
    %c1_i32_29 = arith.constant 1 : i32
    %76 = arith.select %75, %c1_i32_29, %c16_i32_27 : i32
    %77 = vector.broadcast %76 : i32 to vector<32x64xi32>
    %78 = arith.remsi %74, %77 : vector<32x64xi32>
    %c0_i32_30 = arith.constant 0 : i32
    %79 = vector.broadcast %c0_i32_30 : i32 to vector<32x64xi32>
    %80 = arith.cmpi ne, %78, %79 : vector<32x64xi32>
    %c0_i32_31 = arith.constant 0 : i32
    %81 = vector.broadcast %c0_i32_31 : i32 to vector<32x64xi32>
    %82 = arith.cmpi slt, %78, %81 : vector<32x64xi32>
    %c0_i32_32 = arith.constant 0 : i32
    %83 = arith.cmpi slt, %76, %c0_i32_32 : i32
    %84 = vector.broadcast %83 : i1 to vector<32x64xi1>
    %85 = vector.broadcast %84 : vector<32x64xi1> to vector<32x64xi1>
    %86 = arith.xori %82, %85 : vector<32x64xi1>
    %87 = arith.andi %86, %80 : vector<32x64xi1>
    %88 = vector.broadcast %76 : i32 to vector<32x64xi32>
    %89 = arith.addi %78, %88 : vector<32x64xi32>
    %90 = arith.select %87, %89, %78 : vector<32x64xi1>, vector<32x64xi32>
    %c15_i32 = arith.constant 15 : i32
    %91 = vector.broadcast %c15_i32 : i32 to vector<32x64xi32>
    %92 = arith.cmpi ne, %90, %91 : vector<32x64xi32>
    %cst_33 = arith.constant 0.000000e+00 : f32
    %93 = vector.broadcast %cst_33 : f32 to vector<32x64xf32>
    %94 = arith.select %92, %73, %93 : vector<32x64xi1>, vector<32x64xf32>
    %95 = arith.truncf %94 : vector<32x64xf32> to vector<32x64xbf16>
    %c2 = arith.constant 2 : index
    %c0_34 = arith.constant 0 : index
    %c0_35 = arith.constant 0 : index
    %96 = vector.load %arg1[%c2, %c0_34, %c0_35] : memref<3x64x128xbf16, #tpu.memory_space<vmem>>, vector<1x64x128xbf16>
    %97 = vector.shape_cast %96 : vector<1x64x128xbf16> to vector<64x128xbf16>
    %cst_36 = arith.constant dense<0.000000e+00> : vector<32x128xf32>
    %98 = tpu.matmul %95, %97, %cst_36 {dimension_numbers = #tpu.dot_dimension_numbers<[1], [0], [0], [1], [0, 0, 1, 1], [], []>} : vector<32x64xbf16>, vector<64x128xbf16>, vector<32x128xf32> -> vector<32x128xf32>
    %99 = arith.addf %72, %98 : vector<32x128xf32>
    %c0_37 = arith.constant 0 : index
    %c0_38 = arith.constant 0 : index
    %100 = vector.load %arg4[%c0_37, %c0_38] : memref<1x128xf32, #tpu.memory_space<vmem>>, vector<1x128xf32>
    %c0_39 = arith.constant 0 : index
    %c0_40 = arith.constant 0 : index
    %101 = vector.load %arg5[%c0_39, %c0_40] : memref<1x128xf32, #tpu.memory_space<vmem>>, vector<1x128xf32>
    %cst_41 = arith.constant dense<0.000000e+00> : vector<128xf32>
    %102 = vector.multi_reduction <add>, %99, %cst_41 [0] : vector<32x128xf32> to vector<128xf32>
    %103 = vector.shape_cast %102 : vector<128xf32> to vector<1x128xf32>
    %cst_42 = arith.constant dense<0.000000e+00> : vector<1x128xf32>
    %104 = tpu.matmul %103, %37, %cst_42 {dimension_numbers = #tpu.dot_dimension_numbers<[1], [0], [0], [1], [0, 0, 1, 1], [], []>} : vector<1x128xf32>, vector<128x128xf32>, vector<1x128xf32> -> vector<1x128xf32>
    %cst_43 = arith.constant 0.001953125 : f32
    %105 = vector.broadcast %cst_43 : f32 to vector<1x128xf32>
    %106 = arith.mulf %104, %105 : vector<1x128xf32>
    %107 = vector.broadcast %106 : vector<1x128xf32> to vector<32x128xf32>
    %108 = arith.subf %99, %107 : vector<32x128xf32>
    %109 = arith.mulf %108, %108 : vector<32x128xf32>
    %cst_44 = arith.constant dense<0.000000e+00> : vector<128xf32>
    %110 = vector.multi_reduction <add>, %109, %cst_44 [0] : vector<32x128xf32> to vector<128xf32>
    %111 = vector.shape_cast %110 : vector<128xf32> to vector<1x128xf32>
    %cst_45 = arith.constant dense<0.000000e+00> : vector<1x128xf32>
    %112 = tpu.matmul %111, %37, %cst_45 {dimension_numbers = #tpu.dot_dimension_numbers<[1], [0], [0], [1], [0, 0, 1, 1], [], []>} : vector<1x128xf32>, vector<128x128xf32>, vector<1x128xf32> -> vector<1x128xf32>
    %cst_46 = arith.constant 0.001953125 : f32
    %113 = vector.broadcast %cst_46 : f32 to vector<1x128xf32>
    %114 = arith.mulf %112, %113 : vector<1x128xf32>
    %cst_47 = arith.constant 9.99999974E-6 : f32
    %115 = vector.broadcast %cst_47 : f32 to vector<1x128xf32>
    %116 = arith.addf %114, %115 : vector<1x128xf32>
    %117 = math.rsqrt %116 : vector<1x128xf32>
    %118 = vector.broadcast %117 : vector<1x128xf32> to vector<32x128xf32>
    %119 = arith.mulf %108, %118 : vector<32x128xf32>
    %120 = vector.broadcast %100 : vector<1x128xf32> to vector<32x128xf32>
    %121 = arith.mulf %119, %120 : vector<32x128xf32>
    %122 = vector.broadcast %101 : vector<1x128xf32> to vector<32x128xf32>
    %123 = arith.addf %121, %122 : vector<32x128xf32>
    %cst_48 = arith.constant 0.000000e+00 : f32
    %124 = vector.broadcast %cst_48 : f32 to vector<32x128xf32>
    %125 = arith.cmpf oge, %123, %124 : vector<32x128xf32>
    %cst_49 = arith.constant 2.000000e-01 : f32
    %126 = vector.broadcast %cst_49 : f32 to vector<32x128xf32>
    %127 = arith.mulf %126, %123 : vector<32x128xf32>
    %128 = arith.select %125, %123, %127 : vector<32x128xi1>, vector<32x128xf32>
    %cst_50 = arith.constant 0.000000e+00 : f32
    %129 = vector.broadcast %cst_50 : f32 to vector<32x128xf32>
    %c1_i32_51 = arith.constant 1 : i32
    %130 = tpu.dynamic_rotate %128 by %c1_i32_51 dim 0 : vector<32x128xf32>, i32 -> vector<32x128xf32>
    %131 = tpu.iota {dimensions = array<i32: 0>} : vector<32x128xi32>
    %c16_i32_52 = arith.constant 16 : i32
    %c0_i32_53 = arith.constant 0 : i32
    %132 = arith.cmpi eq, %c16_i32_52, %c0_i32_53 : i32
    %c1_i32_54 = arith.constant 1 : i32
    %133 = arith.select %132, %c1_i32_54, %c16_i32_52 : i32
    %134 = vector.broadcast %133 : i32 to vector<32x128xi32>
    %135 = arith.remsi %131, %134 : vector<32x128xi32>
    %c0_i32_55 = arith.constant 0 : i32
    %136 = vector.broadcast %c0_i32_55 : i32 to vector<32x128xi32>
    %137 = arith.cmpi ne, %135, %136 : vector<32x128xi32>
    %c0_i32_56 = arith.constant 0 : i32
    %138 = vector.broadcast %c0_i32_56 : i32 to vector<32x128xi32>
    %139 = arith.cmpi slt, %135, %138 : vector<32x128xi32>
    %c0_i32_57 = arith.constant 0 : i32
    %140 = arith.cmpi slt, %133, %c0_i32_57 : i32
    %141 = vector.broadcast %140 : i1 to vector<32x128xi1>
    %142 = vector.broadcast %141 : vector<32x128xi1> to vector<32x128xi1>
    %143 = arith.xori %139, %142 : vector<32x128xi1>
    %144 = arith.andi %143, %137 : vector<32x128xi1>
    %145 = vector.broadcast %133 : i32 to vector<32x128xi32>
    %146 = arith.addi %135, %145 : vector<32x128xi32>
    %147 = arith.select %144, %146, %135 : vector<32x128xi1>, vector<32x128xi32>
    %c0_i32_58 = arith.constant 0 : i32
    %148 = vector.broadcast %c0_i32_58 : i32 to vector<32x128xi32>
    %149 = arith.cmpi ne, %147, %148 : vector<32x128xi32>
    %cst_59 = arith.constant 0.000000e+00 : f32
    %150 = vector.broadcast %cst_59 : f32 to vector<32x128xf32>
    %151 = arith.select %149, %130, %150 : vector<32x128xi1>, vector<32x128xf32>
    %152 = arith.truncf %151 : vector<32x128xf32> to vector<32x128xbf16>
    %c0_60 = arith.constant 0 : index
    %c0_61 = arith.constant 0 : index
    %c0_62 = arith.constant 0 : index
    %153 = vector.load %arg2[%c0_60, %c0_61, %c0_62] : memref<3x128x128xbf16, #tpu.memory_space<vmem>>, vector<1x128x128xbf16>
    %154 = vector.shape_cast %153 : vector<1x128x128xbf16> to vector<128x128xbf16>
    %cst_63 = arith.constant dense<0.000000e+00> : vector<32x128xf32>
    %155 = tpu.matmul %152, %154, %cst_63 {dimension_numbers = #tpu.dot_dimension_numbers<[1], [0], [0], [1], [0, 0, 1, 1], [], []>} : vector<32x128xbf16>, vector<128x128xbf16>, vector<32x128xf32> -> vector<32x128xf32>
    %156 = arith.addf %129, %155 : vector<32x128xf32>
    %157 = arith.truncf %128 : vector<32x128xf32> to vector<32x128xbf16>
    %c1_64 = arith.constant 1 : index
    %c0_65 = arith.constant 0 : index
    %c0_66 = arith.constant 0 : index
    %158 = vector.load %arg2[%c1_64, %c0_65, %c0_66] : memref<3x128x128xbf16, #tpu.memory_space<vmem>>, vector<1x128x128xbf16>
    %159 = vector.shape_cast %158 : vector<1x128x128xbf16> to vector<128x128xbf16>
    %cst_67 = arith.constant dense<0.000000e+00> : vector<32x128xf32>
    %160 = tpu.matmul %157, %159, %cst_67 {dimension_numbers = #tpu.dot_dimension_numbers<[1], [0], [0], [1], [0, 0, 1, 1], [], []>} : vector<32x128xbf16>, vector<128x128xbf16>, vector<32x128xf32> -> vector<32x128xf32>
    %161 = arith.addf %156, %160 : vector<32x128xf32>
    %c31_i32_68 = arith.constant 31 : i32
    %162 = tpu.dynamic_rotate %128 by %c31_i32_68 dim 0 : vector<32x128xf32>, i32 -> vector<32x128xf32>
    %163 = tpu.iota {dimensions = array<i32: 0>} : vector<32x128xi32>
    %c16_i32_69 = arith.constant 16 : i32
    %c0_i32_70 = arith.constant 0 : i32
    %164 = arith.cmpi eq, %c16_i32_69, %c0_i32_70 : i32
    %c1_i32_71 = arith.constant 1 : i32
    %165 = arith.select %164, %c1_i32_71, %c16_i32_69 : i32
    %166 = vector.broadcast %165 : i32 to vector<32x128xi32>
    %167 = arith.remsi %163, %166 : vector<32x128xi32>
    %c0_i32_72 = arith.constant 0 : i32
    %168 = vector.broadcast %c0_i32_72 : i32 to vector<32x128xi32>
    %169 = arith.cmpi ne, %167, %168 : vector<32x128xi32>
    %c0_i32_73 = arith.constant 0 : i32
    %170 = vector.broadcast %c0_i32_73 : i32 to vector<32x128xi32>
    %171 = arith.cmpi slt, %167, %170 : vector<32x128xi32>
    %c0_i32_74 = arith.constant 0 : i32
    %172 = arith.cmpi slt, %165, %c0_i32_74 : i32
    %173 = vector.broadcast %172 : i1 to vector<32x128xi1>
    %174 = vector.broadcast %173 : vector<32x128xi1> to vector<32x128xi1>
    %175 = arith.xori %171, %174 : vector<32x128xi1>
    %176 = arith.andi %175, %169 : vector<32x128xi1>
    %177 = vector.broadcast %165 : i32 to vector<32x128xi32>
    %178 = arith.addi %167, %177 : vector<32x128xi32>
    %179 = arith.select %176, %178, %167 : vector<32x128xi1>, vector<32x128xi32>
    %c15_i32_75 = arith.constant 15 : i32
    %180 = vector.broadcast %c15_i32_75 : i32 to vector<32x128xi32>
    %181 = arith.cmpi ne, %179, %180 : vector<32x128xi32>
    %cst_76 = arith.constant 0.000000e+00 : f32
    %182 = vector.broadcast %cst_76 : f32 to vector<32x128xf32>
    %183 = arith.select %181, %162, %182 : vector<32x128xi1>, vector<32x128xf32>
    %184 = arith.truncf %183 : vector<32x128xf32> to vector<32x128xbf16>
    %c2_77 = arith.constant 2 : index
    %c0_78 = arith.constant 0 : index
    %c0_79 = arith.constant 0 : index
    %185 = vector.load %arg2[%c2_77, %c0_78, %c0_79] : memref<3x128x128xbf16, #tpu.memory_space<vmem>>, vector<1x128x128xbf16>
    %186 = vector.shape_cast %185 : vector<1x128x128xbf16> to vector<128x128xbf16>
    %cst_80 = arith.constant dense<0.000000e+00> : vector<32x128xf32>
    %187 = tpu.matmul %184, %186, %cst_80 {dimension_numbers = #tpu.dot_dimension_numbers<[1], [0], [0], [1], [0, 0, 1, 1], [], []>} : vector<32x128xbf16>, vector<128x128xbf16>, vector<32x128xf32> -> vector<32x128xf32>
    %188 = arith.addf %161, %187 : vector<32x128xf32>
    %c0_81 = arith.constant 0 : index
    %c0_82 = arith.constant 0 : index
    %189 = vector.load %arg6[%c0_81, %c0_82] : memref<1x128xf32, #tpu.memory_space<vmem>>, vector<1x128xf32>
    %c0_83 = arith.constant 0 : index
    %c0_84 = arith.constant 0 : index
    %190 = vector.load %arg7[%c0_83, %c0_84] : memref<1x128xf32, #tpu.memory_space<vmem>>, vector<1x128xf32>
    %cst_85 = arith.constant dense<0.000000e+00> : vector<128xf32>
    %191 = vector.multi_reduction <add>, %188, %cst_85 [0] : vector<32x128xf32> to vector<128xf32>
    %192 = vector.shape_cast %191 : vector<128xf32> to vector<1x128xf32>
    %cst_86 = arith.constant dense<0.000000e+00> : vector<1x128xf32>
    %193 = tpu.matmul %192, %37, %cst_86 {dimension_numbers = #tpu.dot_dimension_numbers<[1], [0], [0], [1], [0, 0, 1, 1], [], []>} : vector<1x128xf32>, vector<128x128xf32>, vector<1x128xf32> -> vector<1x128xf32>
    %cst_87 = arith.constant 0.001953125 : f32
    %194 = vector.broadcast %cst_87 : f32 to vector<1x128xf32>
    %195 = arith.mulf %193, %194 : vector<1x128xf32>
    %196 = vector.broadcast %195 : vector<1x128xf32> to vector<32x128xf32>
    %197 = arith.subf %188, %196 : vector<32x128xf32>
    %198 = arith.mulf %197, %197 : vector<32x128xf32>
    %cst_88 = arith.constant dense<0.000000e+00> : vector<128xf32>
    %199 = vector.multi_reduction <add>, %198, %cst_88 [0] : vector<32x128xf32> to vector<128xf32>
    %200 = vector.shape_cast %199 : vector<128xf32> to vector<1x128xf32>
    %cst_89 = arith.constant dense<0.000000e+00> : vector<1x128xf32>
    %201 = tpu.matmul %200, %37, %cst_89 {dimension_numbers = #tpu.dot_dimension_numbers<[1], [0], [0], [1], [0, 0, 1, 1], [], []>} : vector<1x128xf32>, vector<128x128xf32>, vector<1x128xf32> -> vector<1x128xf32>
    %cst_90 = arith.constant 0.001953125 : f32
    %202 = vector.broadcast %cst_90 : f32 to vector<1x128xf32>
    %203 = arith.mulf %201, %202 : vector<1x128xf32>
    %cst_91 = arith.constant 9.99999974E-6 : f32
    %204 = vector.broadcast %cst_91 : f32 to vector<1x128xf32>
    %205 = arith.addf %203, %204 : vector<1x128xf32>
    %206 = math.rsqrt %205 : vector<1x128xf32>
    %207 = vector.broadcast %206 : vector<1x128xf32> to vector<32x128xf32>
    %208 = arith.mulf %197, %207 : vector<32x128xf32>
    %209 = vector.broadcast %189 : vector<1x128xf32> to vector<32x128xf32>
    %210 = arith.mulf %208, %209 : vector<32x128xf32>
    %211 = vector.broadcast %190 : vector<1x128xf32> to vector<32x128xf32>
    %212 = arith.addf %210, %211 : vector<32x128xf32>
    %c0_92 = arith.constant 0 : index
    %c0_93 = arith.constant 0 : index
    %213 = vector.load %arg3[%c0_92, %c0_93] : memref<64x128xbf16, #tpu.memory_space<vmem>>, vector<64x128xbf16>
    %cst_94 = arith.constant dense<0.000000e+00> : vector<32x128xf32>
    %214 = tpu.matmul %38, %213, %cst_94 {dimension_numbers = #tpu.dot_dimension_numbers<[1], [0], [0], [1], [0, 0, 1, 1], [], []>} : vector<32x64xbf16>, vector<64x128xbf16>, vector<32x128xf32> -> vector<32x128xf32>
    %c0_95 = arith.constant 0 : index
    %c0_96 = arith.constant 0 : index
    %215 = vector.load %arg8[%c0_95, %c0_96] : memref<1x128xf32, #tpu.memory_space<vmem>>, vector<1x128xf32>
    %c0_97 = arith.constant 0 : index
    %c0_98 = arith.constant 0 : index
    %216 = vector.load %arg9[%c0_97, %c0_98] : memref<1x128xf32, #tpu.memory_space<vmem>>, vector<1x128xf32>
    %cst_99 = arith.constant dense<0.000000e+00> : vector<128xf32>
    %217 = vector.multi_reduction <add>, %214, %cst_99 [0] : vector<32x128xf32> to vector<128xf32>
    %218 = vector.shape_cast %217 : vector<128xf32> to vector<1x128xf32>
    %cst_100 = arith.constant dense<0.000000e+00> : vector<1x128xf32>
    %219 = tpu.matmul %218, %37, %cst_100 {dimension_numbers = #tpu.dot_dimension_numbers<[1], [0], [0], [1], [0, 0, 1, 1], [], []>} : vector<1x128xf32>, vector<128x128xf32>, vector<1x128xf32> -> vector<1x128xf32>
    %cst_101 = arith.constant 0.001953125 : f32
    %220 = vector.broadcast %cst_101 : f32 to vector<1x128xf32>
    %221 = arith.mulf %219, %220 : vector<1x128xf32>
    %222 = vector.broadcast %221 : vector<1x128xf32> to vector<32x128xf32>
    %223 = arith.subf %214, %222 : vector<32x128xf32>
    %224 = arith.mulf %223, %223 : vector<32x128xf32>
    %cst_102 = arith.constant dense<0.000000e+00> : vector<128xf32>
    %225 = vector.multi_reduction <add>, %224, %cst_102 [0] : vector<32x128xf32> to vector<128xf32>
    %226 = vector.shape_cast %225 : vector<128xf32> to vector<1x128xf32>
    %cst_103 = arith.constant dense<0.000000e+00> : vector<1x128xf32>
    %227 = tpu.matmul %226, %37, %cst_103 {dimension_numbers = #tpu.dot_dimension_numbers<[1], [0], [0], [1], [0, 0, 1, 1], [], []>} : vector<1x128xf32>, vector<128x128xf32>, vector<1x128xf32> -> vector<1x128xf32>
    %cst_104 = arith.constant 0.001953125 : f32
    %228 = vector.broadcast %cst_104 : f32 to vector<1x128xf32>
    %229 = arith.mulf %227, %228 : vector<1x128xf32>
    %cst_105 = arith.constant 9.99999974E-6 : f32
    %230 = vector.broadcast %cst_105 : f32 to vector<1x128xf32>
    %231 = arith.addf %229, %230 : vector<1x128xf32>
    %232 = math.rsqrt %231 : vector<1x128xf32>
    %233 = vector.broadcast %232 : vector<1x128xf32> to vector<32x128xf32>
    %234 = arith.mulf %223, %233 : vector<32x128xf32>
    %235 = vector.broadcast %215 : vector<1x128xf32> to vector<32x128xf32>
    %236 = arith.mulf %234, %235 : vector<32x128xf32>
    %237 = vector.broadcast %216 : vector<1x128xf32> to vector<32x128xf32>
    %238 = arith.addf %236, %237 : vector<32x128xf32>
    %239 = arith.addf %212, %238 : vector<32x128xf32>
    %cst_106 = arith.constant 0.000000e+00 : f32
    %240 = vector.broadcast %cst_106 : f32 to vector<32x128xf32>
    %241 = arith.cmpf oge, %239, %240 : vector<32x128xf32>
    %cst_107 = arith.constant 2.000000e-01 : f32
    %242 = vector.broadcast %cst_107 : f32 to vector<32x128xf32>
    %243 = arith.mulf %242, %239 : vector<32x128xf32>
    %244 = arith.select %241, %239, %243 : vector<32x128xi1>, vector<32x128xf32>
    %c0_108 = arith.constant 0 : index
    %c0_109 = arith.constant 0 : index
    %245 = vector.load %arg10[%c0_108, %c0_109] : memref<32x128xf32, #tpu.memory_space<vmem>>, vector<32x128xf32>
    tpu.vector_store %arg10[%c0_108, %c0_109], %244 {strides = array<i32>} : memref<32x128xf32, #tpu.memory_space<vmem>>, vector<32x128xf32>,
    return
  }
}

</mosaic_0001>

<bundles_post_ra>
// kernel: residual_block_nchw.1
= control target key start
LH: loop header
LB: loop body
LE: loop exit
PB: predicated region body
PF: predicated region fallthrough
CT: control target
= control target key end

     0   :  { %v36_v0 = vlaneseq  ;;  %v2668_v2 = vmov 0.0|0.0   ;;  %vm3330_vm0 = vcmask 523264   ;;  %v2669_v39 = vmov 1.0|1.0   ;;  %s3319_s1 = inlined_call_operand.vmem [shape: bf16[3,64,128], index: 1, kind: input, shape index: {}]   ;;  %s3320_s0 = inlined_call_operand.vmem [shape: bf16[32,64], index: 0, kind: input, shape index: {}]   ;;  %s3321_s2 = inlined_call_operand.vmem [shape: bf16[3,128,128], index: 2, kind: input, shape index: {}]   ;;  %s3322_s4 = inlined_call_operand.vmem [shape: f32[1,128], index: 4, kind: input, shape index: {}]   ;;  %s3323_s5 = inlined_call_operand.vmem [shape: f32[1,128], index: 5, kind: input, shape index: {}]   ;;  %s3324_s3 = inlined_call_operand.vmem [shape: bf16[64,128], index: 3, kind: input, shape index: {}]   ;;  %s3325_s6 = inlined_call_operand.vmem [shape: f32[1,128], index: 6, kind: input, shape index: {}]   ;;  %s3326_s8 = inlined_call_operand.vmem [shape: f32[1,128], index: 8, kind: input, shape index: {}]   ;;  %s3327_s7 = inlined_call_operand.vmem [shape: f32[1,128], index: 7, kind: input, shape index: {}]   ;;  %s3328_s9 = inlined_call_operand.vmem [shape: f32[1,128], index: 9, kind: input, shape index: {}]   ;;  %s3329_s10 = inlined_call_operand.vmem [shape: f32[32,128], index: 10, kind: output, shape index: {}]  }
   0x1   :  { %v2618_v1 = vld [vmem:[%s3319_s1 + $0x20] sm:$0xff]   ;;  %2453 = vmatprep.subr.bf16.mxu1 %v2668_v2  ;;  %v2619_v3 = vld [vmem:[%s3319_s1 + $0x28] sm:$0xff]   ;;  %v2620_v5 = vld [vmem:[%s3319_s1 + $0x30] sm:$0xff]  }
   0x2   :  { %v2735_v4 = vshrl.u32 %v36_v0, 7  ;;  %2135 = vmatprep.subr.bf16.mxu0 %v2618_v1  ;;  %v2743_v6 = vld [vmem:[%s3320_s0] sm:$0xff]   ;;  %v2751_v10 = vld [vmem:[%s3320_s0 + $0x8] sm:$0xff]   ;;  %v2621_v13 = vld [vmem:[%s3319_s1 + $0x38] sm:$0xff]   ;;  %v246_v18 = vand.u32 127, %v36_v0 }
   0x3   :  { %2136 = vmatpush3.bf16.msra.mxu0 %v2618_v1  ;;  %v295_v8 = vunpack.c.l.bf16 %v2743_v6  ;;  %v296_v9 = vunpack.c.h.bf16 %v2743_v6  ;;  %v298_v11 = vunpack.c.h.bf16 %v2751_v10  ;;  %2143 = vmatprep.mubr.msk.bf16.mxu0 %vm3330_vm0, %v2743_v6  ;;  %v2623_v19 = vld [vmem:[%s3319_s1] sm:$0xff]   ;;  %v297_v27 = vunpack.c.l.bf16 %v2751_v10  ;;  %v2625_v28 = vld [vmem:[%s3319_s1 + $0x8] sm:$0xff]   ;;  %v2626_v37 = vld [vmem:[%s3319_s1 + $0x10] sm:$0xff]  }
   0x4   :  { %2137 = vmatprep.subr.bf16.mxu0 %v2619_v3  ;;  %v312_v7 = vand.u32 15, %v2735_v4  ;;  %vm3332_vm1 = vcmp.lt.s32.totalorder %v2735_v4, 1  ;;  %v39_v22 = vadd.s32 16, %v2735_v4  ;;  %v38_v23 = vadd.s32 8, %v2735_v4  ;;  %v2627_v47 = vld [vmem:[%s3319_s1 + $0x18] sm:$0xff]   ;;  %v2628_v55 = vld [vmem:[%s3319_s1 + $0x40] sm:$0xff]  }
   0x5   :  { %v299_v12 = vrot.slane %v295_v8, 7  ;;  %v300_v14 = vrot.slane %v296_v9, 7  ;;  %v302_v15 = vrot.slane %v298_v11, 7  ;;  %v2778_v25 = vadd.s32 24, %v2735_v4  ;;  %v2629_v60 = vld [vmem:[%s3319_s1 + $0x48] sm:$0xff]   ;;  %v2630_v62 = vld [vmem:[%s3319_s1 + $0x50] sm:$0xff]  }
   0x6   :  { %vm2762_vm2 = vcmp.ne.s32.totalorder %v312_v7, 0  ;;  %v57_v26 = vand.u32 7, %v2735_v4  ;;  %v64_v29 = vand.u32 7, %v38_v23  ;;  %v2785_v30 = vand.u32 7, %v246_v18  ;;  %v2631_v0 = vld [vmem:[%s3319_s1 + $0x58] sm:$0xff]   ;;  %v2644_v16 = vld [vmem:[%s3321_s2 + $0x20] sm:$0xff]  }
   0x7   :  { %2138 = vmatpush3.bf16.msra.mxu0 %v2619_v3  ;;  %v307_v17 = vsel %vm3332_vm1, %v302_v15, %v299_v12  ;;  %v306_v20 = vsel %vm3332_vm1, %v299_v12, %v300_v14  ;;  %v71_v31 = vand.u32 7, %v39_v22  ;;  %v78_v32 = vand.u32 7, %v2778_v25  ;;  %v2650_v49 = vld [vmem:[%s3321_s2 + $0x90] sm:$0xff]   ;;  %v2651_v51 = vld [vmem:[%s3321_s2 + $0x98] sm:$0xff]  }
   0x8   :  { %2139 = vmatprep.subr.bf16.mxu0 %v2620_v5  ;;  %v360_v21 = vsel %vm2762_vm2, %v307_v17, 0.0  ;;  %v41_v33 = vadd.s32 32, %v2735_v4  ;;  %v42_v34 = vadd.s32 40, %v2735_v4  ;;  %vm259_vm3 = vcmp.eq.s32.totalorder %v57_v26, %v2785_v30 }
   0x9   :  { %v364_v24 = vpack.c.bf16 %v306_v20, %v360_v21  ;;  %vm260_vm4 = vcmp.eq.s32.totalorder %v64_v29, %v2785_v30  ;;  %vm261_vm6 = vcmp.eq.s32.totalorder %v71_v31, %v2785_v30  ;;  %vm262_vm7 = vcmp.eq.s32.totalorder %v78_v32, %v2785_v30 }
   0xa   :  { %vm2795_vm5 = vmpackc.low %vm260_vm4, %vm259_vm3  ;;  %v301_v36 = vrot.slane %v297_v27, 7  ;;  %v326_v38 = vand.u32 15, %v39_v22  ;;  %v85_v40 = vand.u32 7, %v41_v33  ;;  %v92_v41 = vand.u32 7, %v42_v34 }
   0xb   :  { %2140 = vmatpush3.bf16.msra.mxu0 %v2620_v5  ;;  %2455 = vmatpush3.bf16.msk.msra.mxu1 %vm2795_vm5, %v2669_v39  ;;  %v553_v42 = vrot.slane %v296_v9, 1  ;;  %v554_v43 = vrot.slane %v297_v27, 1  ;;  %v319_v44 = vand.u32 15, %v38_v23  ;;  %vm2808_vm8 = vmpackc.low %vm262_vm7, %vm261_vm6  ;;  %vm3331_vm9 = vcmp.lt.s32.totalorder %v2735_v4, 7 }
   0xc   :  { %2141 = vmatprep.subr.bf16.mxu0 %v2621_v13  ;;  %2456 = vmatprep.subr.bf16.mxu1 %v2668_v2  ;;  %vm263_vm10 = vcmp.eq.s32.totalorder %v85_v40, %v2785_v30  ;;  %vm264_vm11 = vcmp.eq.s32.totalorder %v92_v41, %v2785_v30  ;;  %v552_v46 = vrot.slane %v295_v8, 1  ;;  %v305_v48 = vsel %vm3332_vm1, %v300_v14, %v301_v36 }
   0xd   :  { %vm2820_vm12 = vcmp.ne.s32.totalorder %v326_v38, 0  ;;  %v558_v50 = vsel %vm3331_vm9, %v553_v42, %v554_v43  ;;  %vm2829_vm13 = vcmp.ne.s32.totalorder %v319_v44, 15  ;;  %vm2834_vm14 = vmpackc.low %vm264_vm11, %vm263_vm10  ;;  %v304_v53 = vsel %vm3332_vm1, %v301_v36, %v302_v15 }
   0xe   :  { %v362_v54 = vsel %vm2820_vm12, %v305_v48, 0.0  ;;  %v559_v56 = vsel %vm3331_vm9, %v552_v46, %v553_v42  ;;  %v566_v57 = vsel %vm2829_vm13, %v558_v50, 0.0  ;;  %v555_v61 = vrot.slane %v298_v11, 1 }
   0xf   :  { %2142 = vmatpush3.bf16.msra.mxu0 %v2621_v13  ;;  %2458 = vmatpush3.bf16.msk.msra.mxu1 %vm2808_vm8, %v2669_v39  ;;  %v365_v58 = vpack.c.bf16 %v304_v53, %v362_v54  ;;  %v569_v59 = vpack.c.bf16 %v566_v57, %v559_v56  ;;  %v333_v63 = vand.u32 15, %v2778_v25  ;;  %v3348_v3 = vmov 0  ;;  %v2632_v56 = vld [vmem:[%s3321_s2 + $0x40] sm:$0xff]  }
  0x10   :  { %2147 = vmatprep.subr.bf16.mxu0 %v2623_v19  ;;  %2459 = vmatprep.subr.bf16.mxu1 %v2668_v2  ;;  %v560_v1 = vsel %vm3331_vm9, %v555_v61, %v552_v46  ;;  %v557_v5 = vsel %vm3331_vm9, %v554_v43, %v555_v61  ;;  %v43_v9 = vadd.s32 48, %v2735_v4  ;;  %v44_v11 = vadd.s32 56, %v2735_v4 }
  0x11   :  { %vm2869_vm15 = vcmp.ne.s32.totalorder %v333_v63, 15  ;;  %v45_v14 = vadd.s32 64, %v2735_v4  ;;  %v46_v15 = vadd.s32 72, %v2735_v4  ;;  %v47_v20 = vadd.s32 80, %v2735_v4 }
  0x12   :  { %2144 = vmatmul.mubr.msk.bf16.vlgmr.msra.gmra.mrb[0].mxu0 %vm3330_vm0, %v2751_v10  ;;  %v3349_v3 = vsel %vm2869_vm15, 4294967295, %v3348_v3  ;;  %v568_v7 = vsel %vm2869_vm15, %v560_v1, 0.0  ;;  %v99_v12 = vand.u32 7, %v43_v9  ;;  %v106_v13 = vand.u32 7, %v44_v11 }
  0x13   :  { %2148 = vmatpush3.bf16.msra.mxu0 %v2623_v19  ;;  %2155 = vmatprep.mubr.msk.bf16.mxu0 %vm3330_vm0, %v364_v24  ;;  %v570_v8 = vpack.c.bf16 %v568_v7, %v557_v5  ;;  %v113_v18 = vand.u32 7, %v45_v14  ;;  %v120_v19 = vand.u32 7, %v46_v15  ;;  %v48_v21 = vadd.s32 88, %v2735_v4 }
  0x14   :  { %2149 = vmatprep.subr.bf16.mxu0 %v2625_v28  ;;  %2461 = vmatpush3.bf16.msk.msra.mxu1 %vm2834_vm14, %v2669_v39  ;;  %vm265_vm3 = vcmp.eq.s32.totalorder %v99_v12, %v2785_v30  ;;  %vm266_vm4 = vcmp.eq.s32.totalorder %v106_v13, %v2785_v30  ;;  %v127_v23 = vand.u32 7, %v47_v20  ;;  %v49_v25 = vadd.s32 96, %v2735_v4 }
  0x15   :  { %2462 = vmatprep.subr.bf16.mxu1 %v2668_v2  ;;  %vm2884_vm6 = vmpackc.low %vm266_vm4, %vm265_vm3  ;;  %vm267_vm7 = vcmp.eq.s32.totalorder %v113_v18, %v2785_v30  ;;  %vm268_vm10 = vcmp.eq.s32.totalorder %v120_v19, %v2785_v30  ;;  %v134_v24 = vand.u32 7, %v48_v21  ;;  %v50_v26 = vadd.s32 104, %v2735_v4 }
  0x16   :  { %vm2896_vm11 = vmpackc.low %vm268_vm10, %vm267_vm7  ;;  %vm269_vm3 = vcmp.eq.s32.totalorder %v127_v23, %v2785_v30  ;;  %v51_v31 = vadd.s32 112, %v2735_v4  ;;  %v52_v32 = vadd.s32 120, %v2735_v4  ;;  %v2671_v33 = vmov 0.0   ;;  %v2633_v23 = vld [vmem:[%s3321_s2 + $0x48] sm:$0xff]  }
  0x17   :  { %2150 = vmatpush3.bf16.msra.mxu0 %v2625_v28  ;;  %vm270_vm4 = vcmp.eq.s32.totalorder %v134_v24, %v2785_v30  ;;  %v141_v28 = vand.u32 7, %v49_v25  ;;  %v148_v29 = vand.u32 7, %v50_v26  ;;  %v2978_v57 = vsub.s32 0, %v2735_v4  ;;  %v2634_v24 = vld [vmem:[%s3321_s2 + $0x50] sm:$0xff]   ;;  %v2635_v25 = vld [vmem:[%s3321_s2 + $0x58] sm:$0xff]   ;;  %v2636_v26 = vld [vmem:[%s3321_s2 + $0x60] sm:$0xff]  }
  0x18   :  { %2151 = vmatprep.subr.bf16.mxu0 %v2626_v37  ;;  %2464 = vmatpush3.bf16.msk.msra.mxu1 %vm2884_vm6, %v2669_v39  ;;  %vm2908_vm7 = vmpackc.low %vm270_vm4, %vm269_vm3  ;;  %vm3334_vm3 = vmmov 0   ;;  %v155_v36 = vand.u32 7, %v51_v31  ;;  %v2639_v31 = vld [vmem:[%s3321_s2 + $0x78] sm:$0xff]  }
  0x19   :  { %2465 = vmatprep.subr.bf16.mxu1 %v2668_v2  ;;  %vm271_vm10 = vcmp.eq.s32.totalorder %v141_v28, %v2785_v30  ;;  %2203 = vmatprep.mubr.msk.f32.mxu1 %vm3334_vm3, %v2671_v33  ;;  %v2637_v28 = vld [vmem:[%s3321_s2 + $0x68] sm:$0xff]  }
  0x1a   :  { %vm273_vm9 = vcmp.eq.s32.totalorder %v155_v36, %v2785_v30 }
  0x1b   :  { %2152 = vmatpush3.bf16.msra.mxu0 %v2626_v37  ;;  %v162_v37 = vand.u32 7, %v52_v32  ;;  %v2640_v32 = vld [vmem:[%s3321_s2] sm:$0xff]  }
  0x1c   :  { %2153 = vmatprep.subr.bf16.mxu0 %v2627_v47  ;;  %2467 = vmatpush3.bf16.msk.msra.mxu1 %vm2896_vm11, %v2669_v39 }
  0x1d   :  { %2468 = vmatprep.subr.bf16.mxu1 %v2668_v2  ;;  %vm274_vm1 = vcmp.eq.s32.totalorder %v162_v37, %v2785_v30 }
  0x1e   :  { %vm2932_vm15 = vmpackc.low %vm274_vm1, %vm273_vm9 }
  0x1f   :  { %2154 = vmatpush3.bf16.msra.mxu0 %v2627_v47 }
  0x20   :  { %2159 = vmatprep.subr.bf16.mxu0 %v2628_v55  ;;  %2470 = vmatpush3.bf16.msk.msra.mxu1 %vm2908_vm7, %v2669_v39 }
  0x21   :  { %2471 = vmatprep.subr.bf16.mxu1 %v2668_v2 }
  0x22   :  { %2156 = vmatmul.mubr.msk.bf16.vlgmr.msra.gmra.mrb[0].mxu0 %vm3330_vm0, %v365_v58 }
  0x23   :  { %2160 = vmatpush3.bf16.msra.mxu0 %v2628_v55  ;;  %2167 = vmatprep.mubr.msk.bf16.mxu0 %vm3330_vm0, %v569_v59 }
  0x24   :  { %2161 = vmatprep.subr.bf16.mxu0 %v2629_v60 }
  0x27   :  { %2162 = vmatpush3.bf16.msra.mxu0 %v2629_v60 }
  0x28   :  { %2163 = vmatprep.subr.bf16.mxu0 %v2630_v62 }
  0x2b   :  { %2164 = vmatpush3.bf16.msra.mxu0 %v2630_v62 }
  0x2c   :  { %2165 = vmatprep.subr.bf16.mxu0 %v2631_v0 }
  0x2f   :  { %2166 = vmatpush3.bf16.msra.mxu0 %v2631_v0 }
  0x30   :  { %2241 = vmatprep.subr.bf16.mxu0 %v2632_v56 }
  0x32   :  { %2168 = vmatmul.mubr.msk.bf16.vlgmr.msra.gmra.mrb[0].mxu0 %vm3330_vm0, %v570_v8  ;;  %vm272_vm0 = vcmp.eq.s32.totalorder %v148_v29, %v2785_v30  ;;  %v2638_v29 = vld [vmem:[%s3321_s2 + $0x70] sm:$0xff]  }
  0x33   :  { %vm2922_vm4 = vmpackc.low %vm272_vm0, %vm271_vm10  ;;  %2242 = vmatpush3.bf16.msra.mxu0 %v2632_v56 }
  0x34   :  { %2473 = vmatpush3.bf16.msk.msra.mxu1 %vm2922_vm4, %v2669_v39  ;;  %2243 = vmatprep.subr.bf16.mxu0 %v2633_v23 }
  0x35   :  { %2474 = vmatprep.subr.bf16.mxu1 %v2668_v2 }
  0x37   :  { %2244 = vmatpush3.bf16.msra.mxu0 %v2633_v23  ;;  %v2642_v23 = vld [vmem:[%s3321_s2 + $0x10] sm:$0xff]  }
  0x38   :  { %2476 = vmatpush3.bf16.msk.msra.mxu1 %vm2932_vm15, %v2669_v39  ;;  %2245 = vmatprep.subr.bf16.mxu0 %v2634_v24 }
  0x39   :  { %2477 = vmatprep.subr.bf16.mxu1 %v2668_v2 }
  0x3b   :  { %2246 = vmatpush3.bf16.msra.mxu0 %v2634_v24  ;;  %v2643_v24 = vld [vmem:[%s3321_s2 + $0x18] sm:$0xff]  }
  0x3c   :  { %2247 = vmatprep.subr.bf16.mxu0 %v2635_v25 }
  0x3f   :  { %2248 = vmatpush3.bf16.msra.mxu0 %v2635_v25  ;;  %v2645_v25 = vld [vmem:[%s3321_s2 + $0x28] sm:$0xff]  }
  0x40   :  { %2249 = vmatprep.subr.bf16.mxu0 %v2636_v26 }
  0x43   :  { %2250 = vmatpush3.bf16.msra.mxu0 %v2636_v26  ;;  %v2646_v26 = vld [vmem:[%s3321_s2 + $0x30] sm:$0xff]  }
  0x44   :  { %2251 = vmatprep.subr.bf16.mxu0 %v2637_v28 }
  0x47   :  { %2252 = vmatpush3.bf16.msra.mxu0 %v2637_v28  ;;  %v2647_v28 = vld [vmem:[%s3321_s2 + $0x38] sm:$0xff]  }
  0x48   :  { %2253 = vmatprep.subr.bf16.mxu0 %v2638_v29 }
  0x4b   :  { %2254 = vmatpush3.bf16.msra.mxu0 %v2638_v29 }
  0x4c   :  { %2255 = vmatprep.subr.bf16.mxu0 %v2639_v31 }
  0x4f   :  { %2256 = vmatpush3.bf16.msra.mxu0 %v2639_v31 }
  0x50   :  { %2261 = vmatprep.subr.bf16.mxu0 %v2640_v32 }
 0x105   :  { %v2169_v40 = vpop.f32.mrb[0].mxu0 }
 0x106   :  { %v644_v41 = vpop.f32.mrb[1].mxu0 }
 0x107   :  { %v2170_v42 = vpop.f32.mrb[2].mxu0 }
 0x108   :  { %v647_v43 = vpop.f32.mrb[3].mxu0 }
 0x109   :  { %v665_v44 = vadd.f32 %v647_v43, %v644_v41 }
 0x10b   :  { %v666_v46 = vadd.f32 %v2169_v40, %v665_v44  ;;  %v1835_v44 = vld [vmem:[%s3322_s4] ss:$0 sm:$0xff] }
 0x10d   :  { %v667_v47 = vadd.f32 %v2170_v42, %v666_v46 }
 0x10f   :  { %v668_v48 = vrot.slane %v667_v47, 4 }
 0x111   :  { %v669_v50 = vadd.f32 %v668_v48, %v667_v47 }
 0x113   :  { %v670_v30 = vrot.slane %v669_v50, 2 }
 0x115   :  { %v671_v53 = vadd.f32 %v670_v30, %v669_v50  ;;  %v1836_v30 = vld [vmem:[%s3323_s5] ss:$0 sm:$0xff] }
 0x117   :  { %v672_v54 = vrot.slane %v671_v53, 1 }
 0x119   :  { %v673_v55 = vadd.f32 %v672_v54, %v671_v53 }
 0x11b   :  { %2204 = vmatmul.mubr.f32.vlgmr.msra.gmra.mrb[0].mxu1 %v673_v55 }
 0x11c   :  { %2479 = vmatpush3.bf16.msk.msra.mxu1 %vm2795_vm5, %v2669_v39  ;;  %2238 = vmatprep.mubr.msk.f32.mxu1 %vm3334_vm3, %v2671_v33 }
 0x11d   :  { %2480 = vmatprep.subr.bf16.mxu1 %v2668_v2 }
 0x120   :  { %2482 = vmatpush3.bf16.msk.msra.mxu1 %vm2808_vm8, %v2669_v39 }
 0x121   :  { %2483 = vmatprep.subr.bf16.mxu1 %v2668_v2 }
 0x124   :  { %2485 = vmatpush3.bf16.msk.msra.mxu1 %vm2834_vm14, %v2669_v39 }
 0x125   :  { %2486 = vmatprep.subr.bf16.mxu1 %v2668_v2 }
 0x128   :  { %2488 = vmatpush3.bf16.msk.msra.mxu1 %vm2884_vm6, %v2669_v39 }
 0x129   :  { %2489 = vmatprep.subr.bf16.mxu1 %v2668_v2 }
 0x12c   :  { %2491 = vmatpush3.bf16.msk.msra.mxu1 %vm2896_vm11, %v2669_v39 }
 0x12d   :  { %2492 = vmatprep.subr.bf16.mxu1 %v2668_v2 }
 0x130   :  { %2494 = vmatpush3.bf16.msk.msra.mxu1 %vm2908_vm7, %v2669_v39 }
 0x131   :  { %2495 = vmatprep.subr.bf16.mxu1 %v2668_v2 }
 0x134   :  { %2497 = vmatpush3.bf16.msk.msra.mxu1 %vm2922_vm4, %v2669_v39 }
 0x135   :  { %2498 = vmatprep.subr.bf16.mxu1 %v2668_v2 }
 0x138   :  { %2500 = vmatpush3.bf16.msk.msra.mxu1 %vm2932_vm15, %v2669_v39 }
 0x139   :  { %2501 = vmatprep.subr.bf16.mxu1 %v2668_v2 }
 0x1ee   :  { %v740_v58 = vpop.f32.mrb[0].mxu1 }
 0x1ef   :  { %v744_v59 = vmul.f32 0.001953125, %v740_v58  ;;  %v2205_v60 = vpop.f32.mrb[1].mxu1 }
 0x1f1   :  { %v748_v61 = vrot.slane %v744_v59, %v2978_v57 }
 0x1f3   :  { %v2981_v62 = vsub.f32 %v644_v41, %v748_v61  ;;  %v2983_v63 = vsub.f32 %v647_v43, %v748_v61  ;;  %v2985_v0 = vsub.f32 %v2169_v40, %v748_v61  ;;  %v2987_v1 = vsub.f32 %v2170_v42, %v748_v61 }
 0x1f5   :  { %v753_v5 = vmul.f32 %v2981_v62, %v2981_v62  ;;  %v754_v7 = vmul.f32 %v2983_v63, %v2983_v63  ;;  %v755_v8 = vmul.f32 %v2985_v0, %v2985_v0  ;;  %v756_v11 = vmul.f32 %v2987_v1, %v2987_v1 }
 0x1f7   :  { %v757_v9 = vadd.f32 %v754_v7, %v753_v5 }
 0x1f9   :  { %v758_v12 = vadd.f32 %v757_v9, %v755_v8 }
 0x1fb   :  { %v759_v13 = vadd.f32 %v758_v12, %v756_v11 }
 0x1fd   :  { %v760_v14 = vrot.slane %v759_v13, 4 }
 0x1ff   :  { %v761_v15 = vadd.f32 %v760_v14, %v759_v13 }
 0x201   :  { %v762_v18 = vrot.slane %v761_v15, 2 }
 0x203   :  { %v763_v19 = vadd.f32 %v762_v18, %v761_v15  ;;  %v2641_v18 = vld [vmem:[%s3321_s2 + $0x8] sm:$0xff]  }
 0x205   :  { %v764_v20 = vrot.slane %v763_v19, 1 }
 0x207   :  { %v765_v21 = vadd.f32 %v764_v20, %v763_v19 }
 0x209   :  { %2239 = vmatmul.mubr.f32.vlgmr.msra.gmra.mrb[2].mxu1 %v765_v21 }
 0x20a   :  { %2503 = vmatpush3.bf16.msk.msra.mxu1 %vm2795_vm5, %v2669_v39  ;;  %2333 = vmatprep.mubr.msk.f32.mxu1 %vm3334_vm3, %v2671_v33 }
 0x20b   :  { %2504 = vmatprep.subr.bf16.mxu1 %v2668_v2 }
 0x20e   :  { %2506 = vmatpush3.bf16.msk.msra.mxu1 %vm2808_vm8, %v2669_v39 }
 0x20f   :  { %2507 = vmatprep.subr.bf16.mxu1 %v2668_v2 }
 0x212   :  { %2509 = vmatpush3.bf16.msk.msra.mxu1 %vm2834_vm14, %v2669_v39 }
 0x213   :  { %2510 = vmatprep.subr.bf16.mxu1 %v2668_v2 }
 0x216   :  { %2512 = vmatpush3.bf16.msk.msra.mxu1 %vm2884_vm6, %v2669_v39 }
 0x217   :  { %2513 = vmatprep.subr.bf16.mxu1 %v2668_v2 }
 0x21a   :  { %2515 = vmatpush3.bf16.msk.msra.mxu1 %vm2896_vm11, %v2669_v39 }
 0x21b   :  { %2516 = vmatprep.subr.bf16.mxu1 %v2668_v2 }
 0x21e   :  { %2518 = vmatpush3.bf16.msk.msra.mxu1 %vm2908_vm7, %v2669_v39 }
 0x21f   :  { %2519 = vmatprep.subr.bf16.mxu1 %v2668_v2 }
 0x222   :  { %2521 = vmatpush3.bf16.msk.msra.mxu1 %vm2922_vm4, %v2669_v39 }
 0x223   :  { %2522 = vmatprep.subr.bf16.mxu1 %v2668_v2 }
 0x226   :  { %2524 = vmatpush3.bf16.msk.msra.mxu1 %vm2932_vm15, %v2669_v39 }
 0x227   :  { %2525 = vmatprep.subr.bf16.mxu1 %v2668_v2 }
 0x2dc   :  { %v832_v36 = vpop.f32.mrb[2].mxu1 }
 0x2dd   :  { %v836_v37 = vmul.f32 0.001953125, %v832_v36  ;;  %v2240_v40 = vpop.f32.mrb[3].mxu1 }
 0x2df   :  { %v837_v41 = vadd.f32 1e-05, %v836_v37  ;;  %v2648_v37 = vld [vmem:[%s3321_s2 + $0x80] sm:$0xff]  }
 0x2e1   :  { %2662 = vrsqrt.f32 %v837_v41 }
 0x2eb   :  { %v2663_v42 = vpop.eup %2662 }
 0x2ec   :  { %v842_v43 = vrot.slane %v2663_v42, %v2978_v57 }
 0x2ee   :  { %v843_v46 = vmul.f32 %v842_v43, %v2981_v62  ;;  %v844_v47 = vmul.f32 %v842_v43, %v2983_v63  ;;  %v845_v48 = vmul.f32 %v842_v43, %v2985_v0  ;;  %v846_v50 = vmul.f32 %v842_v43, %v2987_v1 }
 0x2f0   :  { %v853_v53 = vmul.f32 %v1835_v44, %v843_v46  ;;  %v854_v54 = vmul.f32 %v1835_v44, %v844_v47  ;;  %v855_v55 = vmul.f32 %v1835_v44, %v845_v48  ;;  %v856_v56 = vmul.f32 %v1835_v44, %v846_v50  ;;  %v2649_v46 = vld [vmem:[%s3321_s2 + $0x88] sm:$0xff]   ;;  %v2652_v48 = vld [vmem:[%s3321_s2 + $0xa0] sm:$0xff]  }
 0x2f1   :  { %v2653_v50 = vld [vmem:[%s3321_s2 + $0xa8] sm:$0xff]  }
 0x2f2   :  { %v863_v58 = vadd.f32 %v1836_v30, %v853_v53  ;;  %v864_v59 = vadd.f32 %v1836_v30, %v854_v54  ;;  %v865_v60 = vadd.f32 %v1836_v30, %v855_v55  ;;  %v866_v61 = vadd.f32 %v1836_v30, %v856_v56  ;;  %v2654_v30 = vld [vmem:[%s3321_s2 + $0xb0] sm:$0xff]   ;;  %v2655_v53 = vld [vmem:[%s3321_s2 + $0xb8] sm:$0xff]  }
 0x2f4   :  { %vm867_vm0 = vcmp.ge.f32.partialorder %v863_v58, 0.0  ;;  %vm868_vm1 = vcmp.ge.f32.partialorder %v864_v59, 0.0  ;;  %v871_v62 = vmul.f32 0.2, %v863_v58  ;;  %v872_v63 = vmul.f32 0.2, %v864_v59 }
 0x2f5   :  { %vm869_vm9 = vcmp.ge.f32.partialorder %v865_v60, 0.0  ;;  %vm870_vm10 = vcmp.ge.f32.partialorder %v866_v61, 0.0  ;;  %v873_v0 = vmul.f32 0.2, %v865_v60  ;;  %v874_v1 = vmul.f32 0.2, %v866_v61 }
 0x2f6   :  { %v3066_v5 = vsel %vm867_vm0, %v863_v58, %v871_v62  ;;  %v876_v7 = vsel %vm868_vm1, %v864_v59, %v872_v63  ;;  %vm3360_vm0 = vcmp.lt.s32.totalorder %v2735_v4, 1 }
 0x2f7   :  { %v879_v8 = vrot.slane %v3066_v5, 7  ;;  %v880_v9 = vrot.slane %v876_v7, 7  ;;  %v909_v11 = vpack.c.bf16 %v876_v7, %v3066_v5  ;;  %v3070_v12 = vsel %vm869_vm9, %v865_v60, %v873_v0  ;;  %vm3361_vm1 = vmmov %vm3360_vm0 }
 0x2f8   :  { %v3072_v13 = vsel %vm870_vm10, %v866_v61, %v874_v1  ;;  %vm2672_vm9 = vmmov 1   ;;  %v881_v29 = vrot.slane %v3070_v12, 7  ;;  %v1122_v31 = vrot.slane %v3066_v5, 1 }
 0x2f9   :  { %2257 = vmatprep.mubr.bf16.mxu0 %v909_v11  ;;  %v882_v14 = vrot.slane %v3072_v13, 7  ;;  %v910_v15 = vpack.c.bf16 %v3072_v13, %v3070_v12  ;;  %v885_v19 = vsel %vm3360_vm0, %v879_v8, %v880_v9  ;;  %vm1869_vm10 = vmpackc.low %vm2672_vm9, %vm2762_vm2  ;;  %v1124_v36 = vrot.slane %v3070_v12, 1  ;;  %v2656_v11 = vld [vmem:[%s3324_s3] sm:$0xff]  }
 0x2fa   :  { %vm3362_vm2 = vmmov %vm3360_vm0  ;;  %v884_v41 = vsel %vm3360_vm0, %v880_v9, %v881_v29  ;;  %v1125_v54 = vrot.slane %v3072_v13, 1 }
 0x2fb   :  { %2258 = vmatmul.mubr.bf16.vlgmr.msra.gmra.mrb[4].mxu0 %v910_v15  ;;  %v886_v20 = vsel %vm3361_vm1, %v882_v14, %v879_v8  ;;  %v883_v40 = vsel %vm3362_vm2, %v881_v29, %v882_v14  ;;  %vm3363_vm1 = vcmp.lt.s32.totalorder %v2735_v4, 7  ;;  %vm1872_vm3 = vmpackc.low %vm2672_vm9, %vm2820_vm12 }
 0x2fc   :  { %2262 = vmatpush3.bf16.msra.mxu0 %v2640_v32  ;;  %v1870_v21 = vpack.c.bf16 %v885_v19, %v886_v20  ;;  %v1123_v32 = vrot.slane %v876_v7, 1  ;;  %v1873_v44 = vpack.c.bf16 %v883_v40, %v884_v41  ;;  %vm1899_vm2 = vmpackc.low %vm2829_vm13, %vm2672_vm9 }
 0x2fd   :  { %2263 = vmatprep.subr.bf16.mxu0 %v2641_v18  ;;  %vm3365_vm12 = vmmov %vm3363_vm1 }
 0x2fe   :  { %2277 = vmatprep.mubr.msk.bf16.mxu0 %vm1869_vm10, %v1870_v21  ;;  %v1127_v42 = vsel %vm3363_vm1, %v1123_v32, %v1124_v36  ;;  %vm3364_vm10 = vmmov %vm3363_vm1  ;;  %v1126_v55 = vsel %vm3365_vm12, %v1124_v36, %v1125_v54 }
 0x2ff   :  { %v1128_v43 = vsel %vm3364_vm10, %v1122_v31, %v1123_v32  ;;  %vm3366_vm13 = vmmov %vm3363_vm1  ;;  %vm3368_vm1 = vmmov 0  }
 0x300   :  { %2264 = vmatpush3.bf16.msra.mxu0 %v2641_v18  ;;  %v1900_v47 = vpack.c.bf16 %v1127_v42, %v1128_v43  ;;  %v1129_v56 = vsel %vm3366_vm13, %v1125_v54, %v1122_v31  ;;  %v2657_v42 = vld [vmem:[%s3324_s3 + $0x8] sm:$0xff]   ;;  %v2658_v43 = vld [vmem:[%s3324_s3 + $0x10] sm:$0xff]  }
 0x301   :  { %2265 = vmatprep.subr.bf16.mxu0 %v2642_v23  ;;  %v1903_v58 = vpack.c.bf16 %v1129_v56, %v1126_v55 }
 0x304   :  { %2266 = vmatpush3.bf16.msra.mxu0 %v2642_v23 }
 0x305   :  { %2267 = vmatprep.subr.bf16.mxu0 %v2643_v24 }
 0x308   :  { %2268 = vmatpush3.bf16.msra.mxu0 %v2643_v24 }
 0x309   :  { %2269 = vmatprep.subr.bf16.mxu0 %v2644_v16 }
 0x30c   :  { %2270 = vmatpush3.bf16.msra.mxu0 %v2644_v16 }
 0x30d   :  { %2271 = vmatprep.subr.bf16.mxu0 %v2645_v25 }
 0x310   :  { %2272 = vmatpush3.bf16.msra.mxu0 %v2645_v25 }
 0x311   :  { %2273 = vmatprep.subr.bf16.mxu0 %v2646_v26 }
 0x314   :  { %2274 = vmatpush3.bf16.msra.mxu0 %v2646_v26 }
 0x315   :  { %2275 = vmatprep.subr.bf16.mxu0 %v2647_v28 }
 0x318   :  { %2276 = vmatpush3.bf16.msra.mxu0 %v2647_v28 }
 0x319   :  { %2281 = vmatprep.subr.bf16.mxu0 %v2648_v37 }
 0x31b   :  { %2278 = vmatmul.mubr.msk.bf16.vlgmr.msra.gmra.mrb[4].mxu0 %vm1872_vm3, %v1873_v44  ;;  %vm3367_vm3 = vnez %v3349_v3  ;;  %v2659_v44 = vld [vmem:[%s3324_s3 + $0x18] sm:$0xff]  }
 0x31c   :  { %2282 = vmatpush3.bf16.msra.mxu0 %v2648_v37  ;;  %2297 = vmatprep.mubr.msk.bf16.mxu0 %vm1899_vm2, %v1900_v47  ;;  %vm1902_vm0 = vmpackc.low %vm3367_vm3, %vm2672_vm9  ;;  %vm3369_vm9 = vcmask 523264  }
 0x31d   :  { %2283 = vmatprep.subr.bf16.mxu0 %v2649_v46  ;;  %vm3370_vm10 = vmmov %vm3369_vm9 }
 0x320   :  { %2284 = vmatpush3.bf16.msra.mxu0 %v2649_v46 }
 0x321   :  { %2285 = vmatprep.subr.bf16.mxu0 %v2650_v49 }
 0x324   :  { %2286 = vmatpush3.bf16.msra.mxu0 %v2650_v49 }
 0x325   :  { %2287 = vmatprep.subr.bf16.mxu0 %v2651_v51 }
 0x328   :  { %2288 = vmatpush3.bf16.msra.mxu0 %v2651_v51 }
 0x329   :  { %2289 = vmatprep.subr.bf16.mxu0 %v2652_v48 }
 0x32c   :  { %2290 = vmatpush3.bf16.msra.mxu0 %v2652_v48 }
 0x32d   :  { %2291 = vmatprep.subr.bf16.mxu0 %v2653_v50 }
 0x330   :  { %2292 = vmatpush3.bf16.msra.mxu0 %v2653_v50 }
 0x331   :  { %2293 = vmatprep.subr.bf16.mxu0 %v2654_v30 }
 0x334   :  { %2294 = vmatpush3.bf16.msra.mxu0 %v2654_v30 }
 0x335   :  { %2295 = vmatprep.subr.bf16.mxu0 %v2655_v53 }
 0x338   :  { %2296 = vmatpush3.bf16.msra.mxu0 %v2655_v53 }
 0x339   :  { %2549 = vmatprep.subr.bf16.mxu0 %v2668_v2 }
 0x33b   :  { %2298 = vmatmul.mubr.msk.bf16.vlgmr.msra.gmra.mrb[4].mxu0 %vm1902_vm0, %v1903_v58 }
 0x33c   :  { %2551 = vmatpush3.bf16.msk.msra.mxu0 %vm2795_vm5, %v2669_v39  ;;  %2415 = vmatprep.mubr.msk.f32.mxu0 %vm3368_vm1, %v2671_v33 }
 0x33d   :  { %2552 = vmatprep.subr.bf16.mxu0 %v2668_v2 }
 0x340   :  { %2554 = vmatpush3.bf16.msk.msra.mxu0 %vm2808_vm8, %v2669_v39 }
 0x341   :  { %2555 = vmatprep.subr.bf16.mxu0 %v2668_v2 }
 0x344   :  { %2557 = vmatpush3.bf16.msk.msra.mxu0 %vm2834_vm14, %v2669_v39 }
 0x345   :  { %2558 = vmatprep.subr.bf16.mxu0 %v2668_v2 }
 0x348   :  { %2560 = vmatpush3.bf16.msk.msra.mxu0 %vm2884_vm6, %v2669_v39 }
 0x349   :  { %2561 = vmatprep.subr.bf16.mxu0 %v2668_v2 }
 0x34c   :  { %2563 = vmatpush3.bf16.msk.msra.mxu0 %vm2896_vm11, %v2669_v39 }
 0x34d   :  { %2564 = vmatprep.subr.bf16.mxu0 %v2668_v2 }
 0x350   :  { %2566 = vmatpush3.bf16.msk.msra.mxu0 %vm2908_vm7, %v2669_v39 }
 0x351   :  { %2567 = vmatprep.subr.bf16.mxu0 %v2668_v2 }
 0x354   :  { %2569 = vmatpush3.bf16.msk.msra.mxu0 %vm2922_vm4, %v2669_v39 }
 0x355   :  { %2570 = vmatprep.subr.bf16.mxu0 %v2668_v2 }
 0x358   :  { %2572 = vmatpush3.bf16.msk.msra.mxu0 %vm2932_vm15, %v2669_v39 }
 0x40e   :  { %v2299_v4 = vpop.f32.mrb[4].mxu0 }
 0x40f   :  { %v1235_v3 = vpop.f32.mrb[5].mxu0 }
 0x410   :  { %v2300_v59 = vpop.f32.mrb[6].mxu0 }
 0x411   :  { %v1238_v60 = vpop.f32.mrb[7].mxu0 }
 0x412   :  { %v1256_v61 = vadd.f32 %v1238_v60, %v1235_v3 }
 0x414   :  { %v1257_v62 = vadd.f32 %v2299_v4, %v1256_v61 }
 0x416   :  { %v1258_v63 = vadd.f32 %v2300_v59, %v1257_v62 }
 0x418   :  { %v1259_v0 = vrot.slane %v1258_v63, 4 }
 0x41a   :  { %v1260_v1 = vadd.f32 %v1259_v0, %v1258_v63 }
 0x41c   :  { %v1261_v5 = vrot.slane %v1260_v1, 2 }
 0x41e   :  { %v1262_v7 = vadd.f32 %v1261_v5, %v1260_v1 }
 0x420   :  { %v1263_v8 = vrot.slane %v1262_v7, 1 }
 0x422   :  { %v1264_v9 = vadd.f32 %v1263_v8, %v1262_v7 }
 0x424   :  { %2334 = vmatmul.mubr.f32.vlgmr.msra.gmra.mrb[4].mxu1 %v1264_v9 }
 0x425   :  { %2527 = vmatpush3.bf16.msk.msra.mxu1 %vm2795_vm5, %v2669_v39  ;;  %2368 = vmatprep.mubr.msk.f32.mxu1 %vm3368_vm1, %v2671_v33 }
 0x426   :  { %2528 = vmatprep.subr.bf16.mxu1 %v2668_v2 }
 0x429   :  { %2530 = vmatpush3.bf16.msk.msra.mxu1 %vm2808_vm8, %v2669_v39 }
 0x42a   :  { %2531 = vmatprep.subr.bf16.mxu1 %v2668_v2 }
 0x42d   :  { %2533 = vmatpush3.bf16.msk.msra.mxu1 %vm2834_vm14, %v2669_v39 }
 0x42e   :  { %2534 = vmatprep.subr.bf16.mxu1 %v2668_v2 }
 0x431   :  { %2536 = vmatpush3.bf16.msk.msra.mxu1 %vm2884_vm6, %v2669_v39 }
 0x432   :  { %2537 = vmatprep.subr.bf16.mxu1 %v2668_v2 }
 0x435   :  { %2539 = vmatpush3.bf16.msk.msra.mxu1 %vm2896_vm11, %v2669_v39 }
 0x436   :  { %2540 = vmatprep.subr.bf16.mxu1 %v2668_v2 }
 0x439   :  { %2542 = vmatpush3.bf16.msk.msra.mxu1 %vm2908_vm7, %v2669_v39 }
 0x43a   :  { %2543 = vmatprep.subr.bf16.mxu1 %v2668_v2 }
 0x43d   :  { %2545 = vmatpush3.bf16.msk.msra.mxu1 %vm2922_vm4, %v2669_v39 }
 0x43e   :  { %2546 = vmatprep.subr.bf16.mxu1 %v2668_v2 }
 0x441   :  { %2548 = vmatpush3.bf16.msk.msra.mxu1 %vm2932_vm15, %v2669_v39 }
 0x442   :  { %2371 = vmatprep.subr.bf16.mxu1 %v2656_v11 }
 0x4f7   :  { %v1331_v12 = vpop.f32.mrb[4].mxu1 }
 0x4f8   :  { %v1335_v13 = vmul.f32 0.001953125, %v1331_v12  ;;  %v2335_v14 = vpop.f32.mrb[5].mxu1 }
 0x4fa   :  { %v1339_v15 = vrot.slane %v1335_v13, %v2978_v57 }
 0x4fc   :  { %v3225_v18 = vsub.f32 %v1235_v3, %v1339_v15  ;;  %v3227_v19 = vsub.f32 %v1238_v60, %v1339_v15  ;;  %v3229_v20 = vsub.f32 %v2299_v4, %v1339_v15  ;;  %v3231_v21 = vsub.f32 %v2300_v59, %v1339_v15 }
 0x4fe   :  { %v1344_v23 = vmul.f32 %v3225_v18, %v3225_v18  ;;  %v1345_v24 = vmul.f32 %v3227_v19, %v3227_v19  ;;  %v1346_v16 = vmul.f32 %v3229_v20, %v3229_v20  ;;  %v1347_v26 = vmul.f32 %v3231_v21, %v3231_v21 }
 0x500   :  { %v1348_v25 = vadd.f32 %v1345_v24, %v1344_v23 }
 0x502   :  { %v1349_v28 = vadd.f32 %v1348_v25, %v1346_v16 }
 0x504   :  { %v1350_v29 = vadd.f32 %v1349_v28, %v1347_v26  ;;  %v1937_v28 = vld [vmem:[%s3325_s6] ss:$0 sm:$0xff] }
 0x506   :  { %v1351_v31 = vrot.slane %v1350_v29, 4 }
 0x508   :  { %v1352_v32 = vadd.f32 %v1351_v31, %v1350_v29 }
 0x50a   :  { %v1353_v36 = vrot.slane %v1352_v32, 2 }
 0x50c   :  { %v1354_v37 = vadd.f32 %v1353_v36, %v1352_v32 }
 0x50e   :  { %v1355_v40 = vrot.slane %v1354_v37, 1 }
 0x510   :  { %v1356_v41 = vadd.f32 %v1355_v40, %v1354_v37 }
 0x512   :  { %2369 = vmatmul.mubr.f32.vlgmr.msra.gmra.mrb[6].mxu1 %v1356_v41 }
 0x513   :  { %2372 = vmatpush3.bf16.msra.mxu1 %v2656_v11  ;;  %2379 = vmatprep.mubr.msk.bf16.mxu1 %vm3369_vm9, %v2743_v6 }
 0x514   :  { %2373 = vmatprep.subr.bf16.mxu1 %v2657_v42 }
 0x517   :  { %2374 = vmatpush3.bf16.msra.mxu1 %v2657_v42 }
 0x518   :  { %2375 = vmatprep.subr.bf16.mxu1 %v2658_v43 }
 0x51b   :  { %2376 = vmatpush3.bf16.msra.mxu1 %v2658_v43 }
 0x51c   :  { %2377 = vmatprep.subr.bf16.mxu1 %v2659_v44 }
 0x51f   :  { %2378 = vmatpush3.bf16.msra.mxu1 %v2659_v44 }
 0x520   :  { %2573 = vmatprep.subr.bf16.mxu1 %v2668_v2 }
 0x522   :  { %2380 = vmatmul.mubr.msk.bf16.vlgmr.msra.gmra.mrb[8].mxu1 %vm3370_vm10, %v2751_v10 }
 0x523   :  { %2575 = vmatpush3.bf16.msk.msra.mxu1 %vm2795_vm5, %v2669_v39  ;;  %2450 = vmatprep.mubr.msk.f32.mxu1 %vm3368_vm1, %v2671_v33 }
 0x524   :  { %2576 = vmatprep.subr.bf16.mxu1 %v2668_v2 }
 0x527   :  { %2578 = vmatpush3.bf16.msk.msra.mxu1 %vm2808_vm8, %v2669_v39 }
 0x528   :  { %2579 = vmatprep.subr.bf16.mxu1 %v2668_v2 }
 0x52b   :  { %2581 = vmatpush3.bf16.msk.msra.mxu1 %vm2834_vm14, %v2669_v39 }
 0x52c   :  { %2582 = vmatprep.subr.bf16.mxu1 %v2668_v2 }
 0x52f   :  { %2584 = vmatpush3.bf16.msk.msra.mxu1 %vm2884_vm6, %v2669_v39 }
 0x530   :  { %2585 = vmatprep.subr.bf16.mxu1 %v2668_v2 }
 0x533   :  { %2587 = vmatpush3.bf16.msk.msra.mxu1 %vm2896_vm11, %v2669_v39 }
 0x534   :  { %2588 = vmatprep.subr.bf16.mxu1 %v2668_v2 }
 0x537   :  { %2590 = vmatpush3.bf16.msk.msra.mxu1 %vm2908_vm7, %v2669_v39 }
 0x538   :  { %2591 = vmatprep.subr.bf16.mxu1 %v2668_v2 }
 0x53b   :  { %2593 = vmatpush3.bf16.msk.msra.mxu1 %vm2922_vm4, %v2669_v39 }
 0x53c   :  { %2594 = vmatprep.subr.bf16.mxu1 %v2668_v2 }
 0x53f   :  { %2596 = vmatpush3.bf16.msk.msra.mxu1 %vm2932_vm15, %v2669_v39 }
 0x5e5   :  { %v1423_v6 = vpop.f32.mrb[6].mxu1 }
 0x5e6   :  { %v2370_v10 = vpop.f32.mrb[7].mxu1  ;;  %v1427_v8 = vmul.f32 0.001953125, %v1423_v6 }
 0x5e8   :  { %v1428_v9 = vadd.f32 1e-05, %v1427_v8 }
 0x5ea   :  { %2664 = vrsqrt.f32 %v1428_v9 }
 0x5f4   :  { %v2665_v15 = vpop.eup %2664 }
 0x5f5   :  { %v2381_v35 = vpop.f32.mrb[8].mxu1  ;;  %v1433_v23 = vrot.slane %v2665_v15, %v2978_v57 }
 0x5f6   :  { %v1524_v45 = vpop.f32.mrb[9].mxu1 }
 0x5f7   :  { %v2382_v52 = vpop.f32.mrb[10].mxu1  ;;  %v1434_v24 = vmul.f32 %v1433_v23, %v3225_v18  ;;  %v1435_v16 = vmul.f32 %v1433_v23, %v3227_v19  ;;  %v1436_v25 = vmul.f32 %v1433_v23, %v3229_v20  ;;  %v1437_v26 = vmul.f32 %v1433_v23, %v3231_v21  ;;  %v1977_v18 = vld [vmem:[%s3326_s8] ss:$0 sm:$0xff] }
 0x5f8   :  { %v1527_v17 = vpop.f32.mrb[11].mxu1  ;;  %v1938_v19 = vld [vmem:[%s3327_s7] ss:$0 sm:$0xff] }
 0x5f9   :  { %v1541_v22 = vadd.f32 %v1527_v17, %v1524_v45  ;;  %v1444_v32 = vmul.f32 %v1937_v28, %v1434_v24  ;;  %v1445_v36 = vmul.f32 %v1937_v28, %v1435_v16  ;;  %v1446_v37 = vmul.f32 %v1937_v28, %v1436_v25 }
 0x5fa   :  { %v1447_v40 = vmul.f32 %v1937_v28, %v1437_v26 }
 0x5fb   :  { %v1542_v27 = vadd.f32 %v2381_v35, %v1541_v22 }
 0x5fd   :  { %v1543_v33 = vadd.f32 %v2382_v52, %v1542_v27 }
 0x5ff   :  { %v1544_v46 = vrot.slane %v1543_v33, 4 }
 0x601   :  { %v1545_v47 = vadd.f32 %v1544_v46, %v1543_v33 }
 0x603   :  { %v1546_v49 = vrot.slane %v1545_v47, 2 }
 0x605   :  { %v1547_v34 = vadd.f32 %v1546_v49, %v1545_v47 }
 0x607   :  { %v1548_v51 = vrot.slane %v1547_v34, 1 }
 0x609   :  { %v1549_v48 = vadd.f32 %v1548_v51, %v1547_v34 }
 0x60b   :  { %2416 = vmatmul.mubr.f32.vlgmr.msra.gmra.mrb[8].mxu0 %v1549_v48 }
 0x6de   :  { %v1616_v2 = vpop.f32.mrb[8].mxu0 }
 0x6df   :  { %v1620_v50 = vmul.f32 0.001953125, %v1616_v2  ;;  %v2417_v38 = vpop.f32.mrb[9].mxu0 }
 0x6e1   :  { %v1624_v39 = vrot.slane %v1620_v50, %v2978_v57 }
 0x6e3   :  { %v1625_v30 = vsub.f32 %v1524_v45, %v1624_v39  ;;  %v1626_v53 = vsub.f32 %v1527_v17, %v1624_v39  ;;  %v1627_v54 = vsub.f32 %v2381_v35, %v1624_v39  ;;  %v1628_v55 = vsub.f32 %v2382_v52, %v1624_v39 }
 0x6e4   :  { %v1454_v35 = vadd.f32 %v1938_v19, %v1444_v32  ;;  %v1455_v45 = vadd.f32 %v1938_v19, %v1445_v36  ;;  %v1456_v52 = vadd.f32 %v1938_v19, %v1446_v37  ;;  %v1457_v17 = vadd.f32 %v1938_v19, %v1447_v40 }
 0x6e5   :  { %v1629_v56 = vmul.f32 %v1625_v30, %v1625_v30  ;;  %v1630_v58 = vmul.f32 %v1626_v53, %v1626_v53  ;;  %v1631_v4 = vmul.f32 %v1627_v54, %v1627_v54  ;;  %v1632_v59 = vmul.f32 %v1628_v55, %v1628_v55 }
 0x6e7   :  { %v1633_v3 = vadd.f32 %v1630_v58, %v1629_v56 }
 0x6e9   :  { %v1634_v60 = vadd.f32 %v1633_v3, %v1631_v4 }
 0x6eb   :  { %v1635_v61 = vadd.f32 %v1634_v60, %v1632_v59 }
 0x6ed   :  { %v1636_v62 = vrot.slane %v1635_v61, 4 }
 0x6ef   :  { %v1637_v63 = vadd.f32 %v1636_v62, %v1635_v61 }
 0x6f1   :  { %v1638_v0 = vrot.slane %v1637_v63, 2 }
 0x6f3   :  { %v1639_v1 = vadd.f32 %v1638_v0, %v1637_v63 }
 0x6f5   :  { %v1640_v5 = vrot.slane %v1639_v1, 1 }
 0x6f7   :  { %v1641_v7 = vadd.f32 %v1640_v5, %v1639_v1 }
 0x6f9   :  { %2451 = vmatmul.mubr.f32.vlgmr.msra.gmra.mrb[12].mxu1 %v1641_v7 }
 0x7cc   :  { %v1708_v11 = vpop.f32.mrb[12].mxu1 }
 0x7cd   :  { %v1712_v12 = vmul.f32 0.001953125, %v1708_v11  ;;  %v2452_v13 = vpop.f32.mrb[13].mxu1 }
 0x7cf   :  { %v1713_v14 = vadd.f32 1e-05, %v1712_v12 }
 0x7d1   :  { %2666 = vrsqrt.f32 %v1713_v14 }
 0x7db   :  { %v2667_v29 = vpop.eup %2666 }
 0x7dc   :  { %v1718_v31 = vrot.slane %v2667_v29, %v2978_v57  ;;  %v1978_v57 = vld [vmem:[%s3328_s9] ss:$0 sm:$0xff] }
 0x7de   :  { %v1719_v20 = vmul.f32 %v1718_v31, %v1625_v30  ;;  %v1720_v21 = vmul.f32 %v1718_v31, %v1626_v53  ;;  %v1721_v41 = vmul.f32 %v1718_v31, %v1627_v54  ;;  %v1722_v42 = vmul.f32 %v1718_v31, %v1628_v55 }
 0x7e0   :  { %v1729_v43 = vmul.f32 %v1977_v18, %v1719_v20  ;;  %v1730_v44 = vmul.f32 %v1977_v18, %v1720_v21  ;;  %v1731_v6 = vmul.f32 %v1977_v18, %v1721_v41  ;;  %v1732_v10 = vmul.f32 %v1977_v18, %v1722_v42 }
 0x7e2   :  { %v1739_v22 = vadd.f32 %v1978_v57, %v1729_v43  ;;  %v1740_v27 = vadd.f32 %v1978_v57, %v1730_v44  ;;  %v1741_v33 = vadd.f32 %v1978_v57, %v1731_v6  ;;  %v1742_v46 = vadd.f32 %v1978_v57, %v1732_v10 }
 0x7e4   :  { %v1743_v47 = vadd.f32 %v1739_v22, %v1454_v35  ;;  %v1744_v49 = vadd.f32 %v1740_v27, %v1455_v45  ;;  %v1745_v34 = vadd.f32 %v1741_v33, %v1456_v52  ;;  %v1746_v51 = vadd.f32 %v1742_v46, %v1457_v17 }
 0x7e6   :  { %vm1747_vm5 = vcmp.ge.f32.partialorder %v1743_v47, 0.0  ;;  %vm1748_vm8 = vcmp.ge.f32.partialorder %v1744_v49, 0.0  ;;  %vm1749_vm14 = vcmp.ge.f32.partialorder %v1745_v34, 0.0  ;;  %vm1750_vm15 = vcmp.ge.f32.partialorder %v1746_v51, 0.0 }
 0x7e7   :  { %v1751_v48 = vmul.f32 0.2, %v1743_v47  ;;  %v1752_v2 = vmul.f32 0.2, %v1744_v49  ;;  %v1753_v50 = vmul.f32 0.2, %v1745_v34 }
 0x7e8   :  { %v1754_v38 = vmul.f32 0.2, %v1746_v51 }
 0x7e9   :  { %v1755_v39 = vsel %vm1747_vm5, %v1743_v47, %v1751_v48  ;;  %v1756_v30 = vsel %vm1748_vm8, %v1744_v49, %v1752_v2  ;;  %v1757_v53 = vsel %vm1749_vm14, %v1745_v34, %v1753_v50 }
 0x7ea   :  { %v1758_v54 = vsel %vm1750_vm15, %v1746_v51, %v1754_v38  ;;  %1759 = vst [vmem:[%s3329_s10] sm:$0xff] %v1755_v39  ;;  %1760 = vst [vmem:[%s3329_s10 + $0x8] sm:$0xff] %v1756_v30 }
 0x7eb   :  { %1761 = vst [vmem:[%s3329_s10 + $0x10] sm:$0xff] %v1757_v53  ;;  %1762 = vst [vmem:[%s3329_s10 + $0x18] sm:$0xff] %v1758_v54 }

</bundles_post_ra>
